<compile_context>
chip_gen: v7x
topology: tpu7x:2x2x1
jax: 0.10.0
libtpu: 0.0.40
codegen_flags: <defaults>
</compile_context>

<pallas_src>
import functools

import jax
import jax.numpy as jnp
from jax import lax
from jax.experimental import pallas as pl
from jax.experimental.pallas import tpu as pltpu


# ---------------------------------------------------------------- kernel ----

def _gat_layer_kernel(adj_ref, x_ref, w_ref, wlT_ref, o_ref, *,
                      num_heads, head_dim, negative_slope, final_layer):
    """Fused GATConv layer.

    adj_ref : (N, N)            dense adjacency, adj[dst, src] in {0, 1}
    x_ref   : (N, Fin)          input node features
    w_ref   : (Fin, H*D + H)    [W | W·a_r  per head]  (er folded into matmul)
    wlT_ref : (H, Fin)          (W·a_l)^T per head     (el in row orientation)
    o_ref   : (N, H*D)  hidden  -> ELU, heads flattened
              (N, D)    final   -> log_softmax(mean over heads)
    """
    H, D = num_heads, head_dim
    x = x_ref[...]                                    # (N, Fin)
    adj = adj_ref[...]                                # (N_dst, N_src)
    mask = adj > 0

    # One MXU pass: Z for all heads + er columns.
    #   zfull[:, :H*D]    = X @ W
    #   zfull[:, H*D + h] = <Z_h, a_r_h> = er_h  (destination term, column)
    zfull = jnp.dot(x, w_ref[...], preferred_element_type=jnp.float32)

    # el for all heads, already laid out with source nodes along lanes:
    #   el_rows[h, j] = <x_j, W_h a_l_h>
    el_rows = lax.dot_general(wlT_ref[...], x, (((1,), (1,)), ((), ())),
                              preferred_element_type=jnp.float32)   # (H, N)

    neg_big = jnp.float32(-1e30)
    outs = []
    for h in range(H):                                 # static; H is 1 or 2
        z_h = zfull[:, h * D:(h + 1) * D]              # (N, D)
        er_col = zfull[:, H * D + h:H * D + h + 1]     # (N, 1)
        e = er_col + el_rows[h:h + 1, :]               # (N_dst, N_src)
        e = jnp.where(e > 0, e, negative_slope * e)    # leaky_relu
        e = jnp.where(mask, e, neg_big)                # mask non-edges
        m = jnp.max(e, axis=1, keepdims=True)
        p = jnp.where(mask, jnp.exp(e - m), 0.0)
        denom = jnp.sum(p, axis=1, keepdims=True)
        denom = jnp.maximum(denom, jnp.float32(1e-30))  # zero-edge-row guard
        inv = pl.reciprocal(denom, approx=True)         # EUP slot, ~free
        out_h = jnp.dot(p, z_h, preferred_element_type=jnp.float32) * inv
        outs.append(out_h)                              # (N, D)

    if not final_layer:
        res = outs[0] if H == 1 else jnp.concatenate(outs, axis=1)  # (N, H*D)
        # ELU; exp arg clamped so the discarded positive branch stays finite.
        res = jnp.where(res > 0, res, jnp.exp(jnp.minimum(res, 0.0)) - 1.0)
        o_ref[...] = res
    else:
        acc = outs[0]
        for h in range(1, H):
            acc = acc + outs[h]
        logits = acc * jnp.float32(1.0 / H)             # mean over heads
        mx = jnp.max(logits, axis=1, keepdims=True)
        s = logits - mx
        lse = jnp.log(jnp.sum(jnp.exp(s), axis=1, keepdims=True))
        o_ref[...] = s - lse                            # log_softmax


# --------------------------------------------------------------- wrappers ---

def gat_layer(adj, h, w, attn_l, attn_r, *, negative_slope, final_layer):
    """One fused GATConv layer.
    Hidden layer: returns (N, H*D) (ELU, heads flattened).
    Final layer : returns (N, D)   (log_softmax of head-mean)."""
    N, Fin = h.shape
    H, D = attn_l.shape

    # Tiny host-side parameter prep: fold attention vectors into projections.
    w3 = w.reshape(Fin, H, D)
    wlT = jnp.einsum("fhd,hd->hf", w3, attn_l)          # (H, Fin)
    wr = jnp.einsum("fhd,hd->fh", w3, attn_r)           # (Fin, H)
    w_aug = jnp.concatenate([w, wr], axis=1)            # (Fin, H*D + H)
    Kw = H * D + H
    out_dim = D if final_layer else H * D

    kernel = functools.partial(
        _gat_layer_kernel, num_heads=H, head_dim=D,
        negative_slope=negative_slope, final_layer=final_layer)

    return pl.pallas_call(
        kernel,
        out_shape=jax.ShapeDtypeStruct((N, out_dim), jnp.float32),
        grid=(1,),
        in_specs=[pl.BlockSpec((N, N), lambda i: (0, 0)),
                  pl.BlockSpec((N, Fin), lambda i: (0, 0)),
                  pl.BlockSpec((Fin, Kw), lambda i: (0, 0)),
                  pl.BlockSpec((H, Fin), lambda i: (0, 0))],
        out_specs=pl.BlockSpec((N, out_dim), lambda i: (0, 0)),
        compiler_params=pltpu.CompilerParams(
            dimension_semantics=("arbitrary",)),
    )(adj, h, w_aug, wlT)


def gat_forward(adj, feature, layers, *, negative_slope):
    """GAT.forward: hidden GATConv layers (ELU, heads flattened), then the
    final GATConv with head-mean + log_softmax fused into its kernel."""
    # TODO(synk): sparse_input linear branch and residual connections omitted
    # (module is constructed with sparse_input=False, residual=False).
    h = feature
    for p in layers[:-1]:
        h = gat_layer(adj, h, p["w"], p["attn_l"], p["attn_r"],
                      negative_slope=negative_slope, final_layer=False)
    p = layers[-1]
    return gat_layer(adj, h, p["w"], p["attn_l"], p["attn_r"],
                     negative_slope=negative_slope, final_layer=True)


# ------------------------------------------------------------------- main ---

if __name__ == "__main__":
    N = 32                 # number of graph nodes
    in_dim = 16
    num_hidden = 16
    num_classes = 8
    num_layers = 2
    heads = [2, 2, 1]
    negative_slope = 0.2

    key = jax.random.PRNGKey(0)
    keys = jax.random.split(key, 8)

    # dense random graph with self loops (every dst has >= 1 edge)
    adj = (jax.random.uniform(keys[0], (N, N)) < 0.2).astype(jnp.float32)
    adj = jnp.maximum(adj, jnp.eye(N, dtype=jnp.float32))
    x = jax.random.normal(keys[1], (N, in_dim), dtype=jnp.float32)

    # layer shapes: (in_feats, num_heads, out_feats)
    layer_dims = [(in_dim, heads[0], num_hidden)]
    for l in range(1, num_layers):
        layer_dims.append((num_hidden * heads[l - 1], heads[l], num_hidden))
    layer_dims.append((num_hidden * heads[-2], heads[-1], num_classes))

    # deterministic xavier-ish init (gain sqrt(2), as in DGL GATConv)
    layers = []
    pkey = keys[2]
    for (fin, H, D) in layer_dims:
        pkey, kw, kl, kr = jax.random.split(pkey, 4)
        gain = 2.0 ** 0.5
        layers.append(dict(
            w=(gain / (fin ** 0.5)) * jax.random.normal(kw, (fin, H * D), jnp.float32),
            attn_l=(gain / (D ** 0.5)) * jax.random.normal(kl, (H, D), jnp.float32),
            attn_r=(gain / (D ** 0.5)) * jax.random.normal(kr, (H, D), jnp.float32),
        ))

    fwd = jax.jit(functools.partial(gat_forward, negative_slope=negative_slope))
    logp = jax.block_until_ready(fwd(adj, x, layers))

    assert logp.shape == (N, num_classes), logp.shape
    # rows of log_softmax must sum (in prob space) to 1
    assert bool(jnp.all(jnp.abs(jnp.sum(jnp.exp(logp), axis=1) - 1.0) < 1e-3))
    print("KERNEL_OK")
</pallas_src>

<mosaic_0001>
module attributes {stable_mosaic.version = 11 : i64} {
  func.func @_gat_layer_kernel(%arg0: i32, %arg1: memref<32x32xf32, #tpu.memory_space<vmem>>, %arg2: memref<32x16xf32, #tpu.memory_space<vmem>>, %arg3: memref<16x34xf32, #tpu.memory_space<vmem>>, %arg4: memref<2x16xf32, #tpu.memory_space<vmem>>, %arg5: memref<32x32xf32, #tpu.memory_space<vmem>>) attributes {dimension_semantics = [#tpu.dimension_semantics<arbitrary>], iteration_bounds = array<i64: 1>, scalar_prefetch = 0 : i64, scratch_operands = 0 : i64, tpu.core_type = #tpu.core_type<tc>, window_params = [{pipeline_mode = #tpu.pipeline_mode<synchronous>, transform_indices = @transform_0, window_bounds = array<i64: 32, 32>}, {pipeline_mode = #tpu.pipeline_mode<synchronous>, transform_indices = @transform_1, window_bounds = array<i64: 32, 16>}, {pipeline_mode = #tpu.pipeline_mode<synchronous>, transform_indices = @transform_2, window_bounds = array<i64: 16, 34>}, {pipeline_mode = #tpu.pipeline_mode<synchronous>, transform_indices = @transform_3, window_bounds = array<i64: 2, 16>}, {pipeline_mode = #tpu.pipeline_mode<synchronous>, transform_indices = @transform_4, window_bounds = array<i64: 32, 32>}]} {
    %c0 = arith.constant 0 : index
    %c0_0 = arith.constant 0 : index
    %0 = vector.load %arg2[%c0, %c0_0] : memref<32x16xf32, #tpu.memory_space<vmem>>, vector<32x16xf32>
    %c0_1 = arith.constant 0 : index
    %c0_2 = arith.constant 0 : index
    %1 = vector.load %arg1[%c0_1, %c0_2] : memref<32x32xf32, #tpu.memory_space<vmem>>, vector<32x32xf32>
    %cst = arith.constant 0.000000e+00 : f32
    %2 = vector.broadcast %cst : f32 to vector<32x32xf32>
    %3 = arith.cmpf ogt, %1, %2 : vector<32x32xf32>
    %c0_3 = arith.constant 0 : index
    %c0_4 = arith.constant 0 : index
    %4 = vector.load %arg3[%c0_3, %c0_4] : memref<16x34xf32, #tpu.memory_space<vmem>>, vector<16x34xf32>
    %cst_5 = arith.constant dense<0.000000e+00> : vector<32x34xf32>
    %5 = tpu.matmul %0, %4, %cst_5 {dimension_numbers = #tpu.dot_dimension_numbers<[1], [0], [0], [1], [0, 0, 1, 1], [], []>} : vector<32x16xf32>, vector<16x34xf32>, vector<32x34xf32> -> vector<32x34xf32>
    %c0_6 = arith.constant 0 : index
    %c0_7 = arith.constant 0 : index
    %6 = vector.load %arg4[%c0_6, %c0_7] : memref<2x16xf32, #tpu.memory_space<vmem>>, vector<2x16xf32>
    %cst_8 = arith.constant dense<0.000000e+00> : vector<2x32xf32>
    %7 = tpu.matmul %6, %0, %cst_8 {dimension_numbers = #tpu.dot_dimension_numbers<[1], [1], [0], [0], [0, 0, 1, 0], [], []>} : vector<2x16xf32>, vector<32x16xf32>, vector<2x32xf32> -> vector<2x32xf32>
    %8 = vector.extract_strided_slice %5 {offsets = [0, 0], sizes = [32, 16], strides = [1, 1]} : vector<32x34xf32> to vector<32x16xf32>
    %9 = vector.extract_strided_slice %5 {offsets = [0, 32], sizes = [32, 1], strides = [1, 1]} : vector<32x34xf32> to vector<32x1xf32>
    %10 = vector.extract_strided_slice %7 {offsets = [0, 0], sizes = [1, 32], strides = [1, 1]} : vector<2x32xf32> to vector<1x32xf32>
    %11 = vector.broadcast %9 : vector<32x1xf32> to vector<32x32xf32>
    %12 = vector.broadcast %10 : vector<1x32xf32> to vector<32x32xf32>
    %13 = arith.addf %11, %12 : vector<32x32xf32>
    %cst_9 = arith.constant 0.000000e+00 : f32
    %14 = vector.broadcast %cst_9 : f32 to vector<32x32xf32>
    %15 = arith.cmpf ogt, %13, %14 : vector<32x32xf32>
    %cst_10 = arith.constant 2.000000e-01 : f32
    %16 = vector.broadcast %cst_10 : f32 to vector<32x32xf32>
    %17 = arith.mulf %16, %13 : vector<32x32xf32>
    %18 = arith.select %15, %13, %17 : vector<32x32xi1>, vector<32x32xf32>
    %cst_11 = arith.constant -1.000000e+30 : f32
    %19 = vector.broadcast %cst_11 : f32 to vector<32x32xf32>
    %20 = arith.select %3, %18, %19 : vector<32x32xi1>, vector<32x32xf32>
    %cst_12 = arith.constant dense<0xFF800000> : vector<32xf32>
    %21 = vector.multi_reduction <maximumf>, %20, %cst_12 [1] : vector<32x32xf32> to vector<32xf32>
    %22 = vector.shape_cast %21 : vector<32xf32> to vector<32x1xf32>
    %23 = vector.broadcast %22 : vector<32x1xf32> to vector<32x32xf32>
    %24 = arith.subf %20, %23 : vector<32x32xf32>
    %25 = math.exp %24 : vector<32x32xf32>
    %cst_13 = arith.constant 0.000000e+00 : f32
    %26 = vector.broadcast %cst_13 : f32 to vector<32x32xf32>
    %27 = arith.select %3, %25, %26 : vector<32x32xi1>, vector<32x32xf32>
    %cst_14 = arith.constant dense<0.000000e+00> : vector<32xf32>
    %28 = vector.multi_reduction <add>, %27, %cst_14 [1] : vector<32x32xf32> to vector<32xf32>
    %29 = vector.shape_cast %28 : vector<32xf32> to vector<32x1xf32>
    %cst_15 = arith.constant 1.000000e-30 : f32
    %30 = vector.broadcast %cst_15 : f32 to vector<32x1xf32>
    %31 = arith.maximumf %29, %30 : vector<32x1xf32>
    %32 = tpu.reciprocal %31 {approx = true} : vector<32x1xf32> -> vector<32x1xf32>
    %cst_16 = arith.constant dense<0.000000e+00> : vector<32x16xf32>
    %33 = tpu.matmul %27, %8, %cst_16 {dimension_numbers = #tpu.dot_dimension_numbers<[1], [0], [0], [1], [0, 0, 1, 1], [], []>} : vector<32x32xf32>, vector<32x16xf32>, vector<32x16xf32> -> vector<32x16xf32>
    %34 = vector.broadcast %32 : vector<32x1xf32> to vector<32x16xf32>
    %35 = arith.mulf %33, %34 : vector<32x16xf32>
    %36 = vector.extract_strided_slice %5 {offsets = [0, 16], sizes = [32, 16], strides = [1, 1]} : vector<32x34xf32> to vector<32x16xf32>
    %37 = vector.extract_strided_slice %5 {offsets = [0, 33], sizes = [32, 1], strides = [1, 1]} : vector<32x34xf32> to vector<32x1xf32>
    %38 = vector.extract_strided_slice %7 {offsets = [1, 0], sizes = [1, 32], strides = [1, 1]} : vector<2x32xf32> to vector<1x32xf32>
    %39 = vector.broadcast %37 : vector<32x1xf32> to vector<32x32xf32>
    %40 = vector.broadcast %38 : vector<1x32xf32> to vector<32x32xf32>
    %41 = arith.addf %39, %40 : vector<32x32xf32>
    %cst_17 = arith.constant 0.000000e+00 : f32
    %42 = vector.broadcast %cst_17 : f32 to vector<32x32xf32>
    %43 = arith.cmpf ogt, %41, %42 : vector<32x32xf32>
    %cst_18 = arith.constant 2.000000e-01 : f32
    %44 = vector.broadcast %cst_18 : f32 to vector<32x32xf32>
    %45 = arith.mulf %44, %41 : vector<32x32xf32>
    %46 = arith.select %43, %41, %45 : vector<32x32xi1>, vector<32x32xf32>
    %cst_19 = arith.constant -1.000000e+30 : f32
    %47 = vector.broadcast %cst_19 : f32 to vector<32x32xf32>
    %48 = arith.select %3, %46, %47 : vector<32x32xi1>, vector<32x32xf32>
    %cst_20 = arith.constant dense<0xFF800000> : vector<32xf32>
    %49 = vector.multi_reduction <maximumf>, %48, %cst_20 [1] : vector<32x32xf32> to vector<32xf32>
    %50 = vector.shape_cast %49 : vector<32xf32> to vector<32x1xf32>
    %51 = vector.broadcast %50 : vector<32x1xf32> to vector<32x32xf32>
    %52 = arith.subf %48, %51 : vector<32x32xf32>
    %53 = math.exp %52 : vector<32x32xf32>
    %cst_21 = arith.constant 0.000000e+00 : f32
    %54 = vector.broadcast %cst_21 : f32 to vector<32x32xf32>
    %55 = arith.select %3, %53, %54 : vector<32x32xi1>, vector<32x32xf32>
    %cst_22 = arith.constant dense<0.000000e+00> : vector<32xf32>
    %56 = vector.multi_reduction <add>, %55, %cst_22 [1] : vector<32x32xf32> to vector<32xf32>
    %57 = vector.shape_cast %56 : vector<32xf32> to vector<32x1xf32>
    %cst_23 = arith.constant 1.000000e-30 : f32
    %58 = vector.broadcast %cst_23 : f32 to vector<32x1xf32>
    %59 = arith.maximumf %57, %58 : vector<32x1xf32>
    %60 = tpu.reciprocal %59 {approx = true} : vector<32x1xf32> -> vector<32x1xf32>
    %cst_24 = arith.constant dense<0.000000e+00> : vector<32x16xf32>
    %61 = tpu.matmul %55, %36, %cst_24 {dimension_numbers = #tpu.dot_dimension_numbers<[1], [0], [0], [1], [0, 0, 1, 1], [], []>} : vector<32x32xf32>, vector<32x16xf32>, vector<32x16xf32> -> vector<32x16xf32>
    %62 = vector.broadcast %60 : vector<32x1xf32> to vector<32x16xf32>
    %63 = arith.mulf %61, %62 : vector<32x16xf32>
    %64 = tpu.concatenate %35, %63 in 1 : vector<32x16xf32>, vector<32x16xf32> -> vector<32x32xf32>
    %cst_25 = arith.constant 0.000000e+00 : f32
    %65 = vector.broadcast %cst_25 : f32 to vector<32x32xf32>
    %66 = arith.cmpf ogt, %64, %65 : vector<32x32xf32>
    %cst_26 = arith.constant 0.000000e+00 : f32
    %67 = vector.broadcast %cst_26 : f32 to vector<32x32xf32>
    %68 = arith.minimumf %64, %67 : vector<32x32xf32>
    %69 = math.exp %68 : vector<32x32xf32>
    %cst_27 = arith.constant 1.000000e+00 : f32
    %70 = vector.broadcast %cst_27 : f32 to vector<32x32xf32>
    %71 = arith.subf %69, %70 : vector<32x32xf32>
    %72 = arith.select %66, %64, %71 : vector<32x32xi1>, vector<32x32xf32>
    %c0_28 = arith.constant 0 : index
    %c0_29 = arith.constant 0 : index
    %73 = vector.load %arg5[%c0_28, %c0_29] : memref<32x32xf32, #tpu.memory_space<vmem>>, vector<32x32xf32>
    tpu.vector_store %arg5[%c0_28, %c0_29], %72 {strides = array<i32>} : memref<32x32xf32, #tpu.memory_space<vmem>>, vector<32x32xf32>,
    return
  }
  func.func @transform_0(%arg0: i32) -> (i32, i32) {
    %c0_i32 = arith.constant 0 : i32
    %c0_i32_0 = arith.constant 0 : i32
    %c0_i32_1 = arith.constant 0 : i32
    return %c0_i32, %c0_i32_0 : i32, i32
  }
  func.func @transform_1(%arg0: i32) -> (i32, i32) {
    %c0_i32 = arith.constant 0 : i32
    %c0_i32_0 = arith.constant 0 : i32
    %c0_i32_1 = arith.constant 0 : i32
    return %c0_i32, %c0_i32_0 : i32, i32
  }
  func.func @transform_2(%arg0: i32) -> (i32, i32) {
    %c0_i32 = arith.constant 0 : i32
    %c0_i32_0 = arith.constant 0 : i32
    %c0_i32_1 = arith.constant 0 : i32
    return %c0_i32, %c0_i32_0 : i32, i32
  }
  func.func @transform_3(%arg0: i32) -> (i32, i32) {
    %c0_i32 = arith.constant 0 : i32
    %c0_i32_0 = arith.constant 0 : i32
    %c0_i32_1 = arith.constant 0 : i32
    return %c0_i32, %c0_i32_0 : i32, i32
  }
  func.func @transform_4(%arg0: i32) -> (i32, i32) {
    %c0_i32 = arith.constant 0 : i32
    %c0_i32_0 = arith.constant 0 : i32
    %c0_i32_1 = arith.constant 0 : i32
    return %c0_i32, %c0_i32_0 : i32, i32
  }
}

module attributes {stable_mosaic.version = 11 : i64} {
  func.func @_gat_layer_kernel(%arg0: i32, %arg1: memref<32x32xf32, #tpu.memory_space<vmem>>, %arg2: memref<32x32xf32, #tpu.memory_space<vmem>>, %arg3: memref<32x34xf32, #tpu.memory_space<vmem>>, %arg4: memref<2x32xf32, #tpu.memory_space<vmem>>, %arg5: memref<32x32xf32, #tpu.memory_space<vmem>>) attributes {dimension_semantics = [#tpu.dimension_semantics<arbitrary>], iteration_bounds = array<i64: 1>, scalar_prefetch = 0 : i64, scratch_operands = 0 : i64, tpu.core_type = #tpu.core_type<tc>, window_params = [{pipeline_mode = #tpu.pipeline_mode<synchronous>, transform_indices = @transform_0, window_bounds = array<i64: 32, 32>}, {pipeline_mode = #tpu.pipeline_mode<synchronous>, transform_indices = @transform_1, window_bounds = array<i64: 32, 32>}, {pipeline_mode = #tpu.pipeline_mode<synchronous>, transform_indices = @transform_2, window_bounds = array<i64: 32, 34>}, {pipeline_mode = #tpu.pipeline_mode<synchronous>, transform_indices = @transform_3, window_bounds = array<i64: 2, 32>}, {pipeline_mode = #tpu.pipeline_mode<synchronous>, transform_indices = @transform_4, window_bounds = array<i64: 32, 32>}]} {
    %c0 = arith.constant 0 : index
    %c0_0 = arith.constant 0 : index
    %0 = vector.load %arg2[%c0, %c0_0] : memref<32x32xf32, #tpu.memory_space<vmem>>, vector<32x32xf32>
    %c0_1 = arith.constant 0 : index
    %c0_2 = arith.constant 0 : index
    %1 = vector.load %arg1[%c0_1, %c0_2] : memref<32x32xf32, #tpu.memory_space<vmem>>, vector<32x32xf32>
    %cst = arith.constant 0.000000e+00 : f32
    %2 = vector.broadcast %cst : f32 to vector<32x32xf32>
    %3 = arith.cmpf ogt, %1, %2 : vector<32x32xf32>
    %c0_3 = arith.constant 0 : index
    %c0_4 = arith.constant 0 : index
    %4 = vector.load %arg3[%c0_3, %c0_4] : memref<32x34xf32, #tpu.memory_space<vmem>>, vector<32x34xf32>
    %cst_5 = arith.constant dense<0.000000e+00> : vector<32x34xf32>
    %5 = tpu.matmul %0, %4, %cst_5 {dimension_numbers = #tpu.dot_dimension_numbers<[1], [0], [0], [1], [0, 0, 1, 1], [], []>} : vector<32x32xf32>, vector<32x34xf32>, vector<32x34xf32> -> vector<32x34xf32>
    %c0_6 = arith.constant 0 : index
    %c0_7 = arith.constant 0 : index
    %6 = vector.load %arg4[%c0_6, %c0_7] : memref<2x32xf32, #tpu.memory_space<vmem>>, vector<2x32xf32>
    %cst_8 = arith.constant dense<0.000000e+00> : vector<2x32xf32>
    %7 = tpu.matmul %6, %0, %cst_8 {dimension_numbers = #tpu.dot_dimension_numbers<[1], [1], [0], [0], [0, 0, 1, 0], [], []>} : vector<2x32xf32>, vector<32x32xf32>, vector<2x32xf32> -> vector<2x32xf32>
    %8 = vector.extract_strided_slice %5 {offsets = [0, 0], sizes = [32, 16], strides = [1, 1]} : vector<32x34xf32> to vector<32x16xf32>
    %9 = vector.extract_strided_slice %5 {offsets = [0, 32], sizes = [32, 1], strides = [1, 1]} : vector<32x34xf32> to vector<32x1xf32>
    %10 = vector.extract_strided_slice %7 {offsets = [0, 0], sizes = [1, 32], strides = [1, 1]} : vector<2x32xf32> to vector<1x32xf32>
    %11 = vector.broadcast %9 : vector<32x1xf32> to vector<32x32xf32>
    %12 = vector.broadcast %10 : vector<1x32xf32> to vector<32x32xf32>
    %13 = arith.addf %11, %12 : vector<32x32xf32>
    %cst_9 = arith.constant 0.000000e+00 : f32
    %14 = vector.broadcast %cst_9 : f32 to vector<32x32xf32>
    %15 = arith.cmpf ogt, %13, %14 : vector<32x32xf32>
    %cst_10 = arith.constant 2.000000e-01 : f32
    %16 = vector.broadcast %cst_10 : f32 to vector<32x32xf32>
    %17 = arith.mulf %16, %13 : vector<32x32xf32>
    %18 = arith.select %15, %13, %17 : vector<32x32xi1>, vector<32x32xf32>
    %cst_11 = arith.constant -1.000000e+30 : f32
    %19 = vector.broadcast %cst_11 : f32 to vector<32x32xf32>
    %20 = arith.select %3, %18, %19 : vector<32x32xi1>, vector<32x32xf32>
    %cst_12 = arith.constant dense<0xFF800000> : vector<32xf32>
    %21 = vector.multi_reduction <maximumf>, %20, %cst_12 [1] : vector<32x32xf32> to vector<32xf32>
    %22 = vector.shape_cast %21 : vector<32xf32> to vector<32x1xf32>
    %23 = vector.broadcast %22 : vector<32x1xf32> to vector<32x32xf32>
    %24 = arith.subf %20, %23 : vector<32x32xf32>
    %25 = math.exp %24 : vector<32x32xf32>
    %cst_13 = arith.constant 0.000000e+00 : f32
    %26 = vector.broadcast %cst_13 : f32 to vector<32x32xf32>
    %27 = arith.select %3, %25, %26 : vector<32x32xi1>, vector<32x32xf32>
    %cst_14 = arith.constant dense<0.000000e+00> : vector<32xf32>
    %28 = vector.multi_reduction <add>, %27, %cst_14 [1] : vector<32x32xf32> to vector<32xf32>
    %29 = vector.shape_cast %28 : vector<32xf32> to vector<32x1xf32>
    %cst_15 = arith.constant 1.000000e-30 : f32
    %30 = vector.broadcast %cst_15 : f32 to vector<32x1xf32>
    %31 = arith.maximumf %29, %30 : vector<32x1xf32>
    %32 = tpu.reciprocal %31 {approx = true} : vector<32x1xf32> -> vector<32x1xf32>
    %cst_16 = arith.constant dense<0.000000e+00> : vector<32x16xf32>
    %33 = tpu.matmul %27, %8, %cst_16 {dimension_numbers = #tpu.dot_dimension_numbers<[1], [0], [0], [1], [0, 0, 1, 1], [], []>} : vector<32x32xf32>, vector<32x16xf32>, vector<32x16xf32> -> vector<32x16xf32>
    %34 = vector.broadcast %32 : vector<32x1xf32> to vector<32x16xf32>
    %35 = arith.mulf %33, %34 : vector<32x16xf32>
    %36 = vector.extract_strided_slice %5 {offsets = [0, 16], sizes = [32, 16], strides = [1, 1]} : vector<32x34xf32> to vector<32x16xf32>
    %37 = vector.extract_strided_slice %5 {offsets = [0, 33], sizes = [32, 1], strides = [1, 1]} : vector<32x34xf32> to vector<32x1xf32>
    %38 = vector.extract_strided_slice %7 {offsets = [1, 0], sizes = [1, 32], strides = [1, 1]} : vector<2x32xf32> to vector<1x32xf32>
    %39 = vector.broadcast %37 : vector<32x1xf32> to vector<32x32xf32>
    %40 = vector.broadcast %38 : vector<1x32xf32> to vector<32x32xf32>
    %41 = arith.addf %39, %40 : vector<32x32xf32>
    %cst_17 = arith.constant 0.000000e+00 : f32
    %42 = vector.broadcast %cst_17 : f32 to vector<32x32xf32>
    %43 = arith.cmpf ogt, %41, %42 : vector<32x32xf32>
    %cst_18 = arith.constant 2.000000e-01 : f32
    %44 = vector.broadcast %cst_18 : f32 to vector<32x32xf32>
    %45 = arith.mulf %44, %41 : vector<32x32xf32>
    %46 = arith.select %43, %41, %45 : vector<32x32xi1>, vector<32x32xf32>
    %cst_19 = arith.constant -1.000000e+30 : f32
    %47 = vector.broadcast %cst_19 : f32 to vector<32x32xf32>
    %48 = arith.select %3, %46, %47 : vector<32x32xi1>, vector<32x32xf32>
    %cst_20 = arith.constant dense<0xFF800000> : vector<32xf32>
    %49 = vector.multi_reduction <maximumf>, %48, %cst_20 [1] : vector<32x32xf32> to vector<32xf32>
    %50 = vector.shape_cast %49 : vector<32xf32> to vector<32x1xf32>
    %51 = vector.broadcast %50 : vector<32x1xf32> to vector<32x32xf32>
    %52 = arith.subf %48, %51 : vector<32x32xf32>
    %53 = math.exp %52 : vector<32x32xf32>
    %cst_21 = arith.constant 0.000000e+00 : f32
    %54 = vector.broadcast %cst_21 : f32 to vector<32x32xf32>
    %55 = arith.select %3, %53, %54 : vector<32x32xi1>, vector<32x32xf32>
    %cst_22 = arith.constant dense<0.000000e+00> : vector<32xf32>
    %56 = vector.multi_reduction <add>, %55, %cst_22 [1] : vector<32x32xf32> to vector<32xf32>
    %57 = vector.shape_cast %56 : vector<32xf32> to vector<32x1xf32>
    %cst_23 = arith.constant 1.000000e-30 : f32
    %58 = vector.broadcast %cst_23 : f32 to vector<32x1xf32>
    %59 = arith.maximumf %57, %58 : vector<32x1xf32>
    %60 = tpu.reciprocal %59 {approx = true} : vector<32x1xf32> -> vector<32x1xf32>
    %cst_24 = arith.constant dense<0.000000e+00> : vector<32x16xf32>
    %61 = tpu.matmul %55, %36, %cst_24 {dimension_numbers = #tpu.dot_dimension_numbers<[1], [0], [0], [1], [0, 0, 1, 1], [], []>} : vector<32x32xf32>, vector<32x16xf32>, vector<32x16xf32> -> vector<32x16xf32>
    %62 = vector.broadcast %60 : vector<32x1xf32> to vector<32x16xf32>
    %63 = arith.mulf %61, %62 : vector<32x16xf32>
    %64 = tpu.concatenate %35, %63 in 1 : vector<32x16xf32>, vector<32x16xf32> -> vector<32x32xf32>
    %cst_25 = arith.constant 0.000000e+00 : f32
    %65 = vector.broadcast %cst_25 : f32 to vector<32x32xf32>
    %66 = arith.cmpf ogt, %64, %65 : vector<32x32xf32>
    %cst_26 = arith.constant 0.000000e+00 : f32
    %67 = vector.broadcast %cst_26 : f32 to vector<32x32xf32>
    %68 = arith.minimumf %64, %67 : vector<32x32xf32>
    %69 = math.exp %68 : vector<32x32xf32>
    %cst_27 = arith.constant 1.000000e+00 : f32
    %70 = vector.broadcast %cst_27 : f32 to vector<32x32xf32>
    %71 = arith.subf %69, %70 : vector<32x32xf32>
    %72 = arith.select %66, %64, %71 : vector<32x32xi1>, vector<32x32xf32>
    %c0_28 = arith.constant 0 : index
    %c0_29 = arith.constant 0 : index
    %73 = vector.load %arg5[%c0_28, %c0_29] : memref<32x32xf32, #tpu.memory_space<vmem>>, vector<32x32xf32>
    tpu.vector_store %arg5[%c0_28, %c0_29], %72 {strides = array<i32>} : memref<32x32xf32, #tpu.memory_space<vmem>>, vector<32x32xf32>,
    return
  }
  func.func @transform_0(%arg0: i32) -> (i32, i32) {
    %c0_i32 = arith.constant 0 : i32
    %c0_i32_0 = arith.constant 0 : i32
    %c0_i32_1 = arith.constant 0 : i32
    return %c0_i32, %c0_i32_0 : i32, i32
  }
  func.func @transform_1(%arg0: i32) -> (i32, i32) {
    %c0_i32 = arith.constant 0 : i32
    %c0_i32_0 = arith.constant 0 : i32
    %c0_i32_1 = arith.constant 0 : i32
    return %c0_i32, %c0_i32_0 : i32, i32
  }
  func.func @transform_2(%arg0: i32) -> (i32, i32) {
    %c0_i32 = arith.constant 0 : i32
    %c0_i32_0 = arith.constant 0 : i32
    %c0_i32_1 = arith.constant 0 : i32
    return %c0_i32, %c0_i32_0 : i32, i32
  }
  func.func @transform_3(%arg0: i32) -> (i32, i32) {
    %c0_i32 = arith.constant 0 : i32
    %c0_i32_0 = arith.constant 0 : i32
    %c0_i32_1 = arith.constant 0 : i32
    return %c0_i32, %c0_i32_0 : i32, i32
  }
  func.func @transform_4(%arg0: i32) -> (i32, i32) {
    %c0_i32 = arith.constant 0 : i32
    %c0_i32_0 = arith.constant 0 : i32
    %c0_i32_1 = arith.constant 0 : i32
    return %c0_i32, %c0_i32_0 : i32, i32
  }
}

module attributes {stable_mosaic.version = 11 : i64} {
  func.func @_gat_layer_kernel(%arg0: i32, %arg1: memref<32x32xf32, #tpu.memory_space<vmem>>, %arg2: memref<32x32xf32, #tpu.memory_space<vmem>>, %arg3: memref<32x9xf32, #tpu.memory_space<vmem>>, %arg4: memref<1x32xf32, #tpu.memory_space<vmem>>, %arg5: memref<32x8xf32, #tpu.memory_space<vmem>>) attributes {dimension_semantics = [#tpu.dimension_semantics<arbitrary>], iteration_bounds = array<i64: 1>, scalar_prefetch = 0 : i64, scratch_operands = 0 : i64, tpu.core_type = #tpu.core_type<tc>, window_params = [{pipeline_mode = #tpu.pipeline_mode<synchronous>, transform_indices = @transform_0, window_bounds = array<i64: 32, 32>}, {pipeline_mode = #tpu.pipeline_mode<synchronous>, transform_indices = @transform_1, window_bounds = array<i64: 32, 32>}, {pipeline_mode = #tpu.pipeline_mode<synchronous>, transform_indices = @transform_2, window_bounds = array<i64: 32, 9>}, {pipeline_mode = #tpu.pipeline_mode<synchronous>, transform_indices = @transform_3, window_bounds = array<i64: 1, 32>}, {pipeline_mode = #tpu.pipeline_mode<synchronous>, transform_indices = @transform_4, window_bounds = array<i64: 32, 8>}]} {
    %c0 = arith.constant 0 : index
    %c0_0 = arith.constant 0 : index
    %0 = vector.load %arg2[%c0, %c0_0] : memref<32x32xf32, #tpu.memory_space<vmem>>, vector<32x32xf32>
    %c0_1 = arith.constant 0 : index
    %c0_2 = arith.constant 0 : index
    %1 = vector.load %arg1[%c0_1, %c0_2] : memref<32x32xf32, #tpu.memory_space<vmem>>, vector<32x32xf32>
    %cst = arith.constant 0.000000e+00 : f32
    %2 = vector.broadcast %cst : f32 to vector<32x32xf32>
    %3 = arith.cmpf ogt, %1, %2 : vector<32x32xf32>
    %c0_3 = arith.constant 0 : index
    %c0_4 = arith.constant 0 : index
    %4 = vector.load %arg3[%c0_3, %c0_4] : memref<32x9xf32, #tpu.memory_space<vmem>>, vector<32x9xf32>
    %cst_5 = arith.constant dense<0.000000e+00> : vector<32x9xf32>
    %5 = tpu.matmul %0, %4, %cst_5 {dimension_numbers = #tpu.dot_dimension_numbers<[1], [0], [0], [1], [0, 0, 1, 1], [], []>} : vector<32x32xf32>, vector<32x9xf32>, vector<32x9xf32> -> vector<32x9xf32>
    %c0_6 = arith.constant 0 : index
    %c0_7 = arith.constant 0 : index
    %6 = vector.load %arg4[%c0_6, %c0_7] : memref<1x32xf32, #tpu.memory_space<vmem>>, vector<1x32xf32>
    %cst_8 = arith.constant dense<0.000000e+00> : vector<1x32xf32>
    %7 = tpu.matmul %6, %0, %cst_8 {dimension_numbers = #tpu.dot_dimension_numbers<[1], [1], [0], [0], [0, 0, 1, 0], [], []>} : vector<1x32xf32>, vector<32x32xf32>, vector<1x32xf32> -> vector<1x32xf32>
    %8 = vector.extract_strided_slice %5 {offsets = [0, 0], sizes = [32, 8], strides = [1, 1]} : vector<32x9xf32> to vector<32x8xf32>
    %9 = vector.extract_strided_slice %5 {offsets = [0, 8], sizes = [32, 1], strides = [1, 1]} : vector<32x9xf32> to vector<32x1xf32>
    %10 = vector.broadcast %9 : vector<32x1xf32> to vector<32x32xf32>
    %11 = vector.broadcast %7 : vector<1x32xf32> to vector<32x32xf32>
    %12 = arith.addf %10, %11 : vector<32x32xf32>
    %cst_9 = arith.constant 0.000000e+00 : f32
    %13 = vector.broadcast %cst_9 : f32 to vector<32x32xf32>
    %14 = arith.cmpf ogt, %12, %13 : vector<32x32xf32>
    %cst_10 = arith.constant 2.000000e-01 : f32
    %15 = vector.broadcast %cst_10 : f32 to vector<32x32xf32>
    %16 = arith.mulf %15, %12 : vector<32x32xf32>
    %17 = arith.select %14, %12, %16 : vector<32x32xi1>, vector<32x32xf32>
    %cst_11 = arith.constant -1.000000e+30 : f32
    %18 = vector.broadcast %cst_11 : f32 to vector<32x32xf32>
    %19 = arith.select %3, %17, %18 : vector<32x32xi1>, vector<32x32xf32>
    %cst_12 = arith.constant dense<0xFF800000> : vector<32xf32>
    %20 = vector.multi_reduction <maximumf>, %19, %cst_12 [1] : vector<32x32xf32> to vector<32xf32>
    %21 = vector.shape_cast %20 : vector<32xf32> to vector<32x1xf32>
    %22 = vector.broadcast %21 : vector<32x1xf32> to vector<32x32xf32>
    %23 = arith.subf %19, %22 : vector<32x32xf32>
    %24 = math.exp %23 : vector<32x32xf32>
    %cst_13 = arith.constant 0.000000e+00 : f32
    %25 = vector.broadcast %cst_13 : f32 to vector<32x32xf32>
    %26 = arith.select %3, %24, %25 : vector<32x32xi1>, vector<32x32xf32>
    %cst_14 = arith.constant dense<0.000000e+00> : vector<32xf32>
    %27 = vector.multi_reduction <add>, %26, %cst_14 [1] : vector<32x32xf32> to vector<32xf32>
    %28 = vector.shape_cast %27 : vector<32xf32> to vector<32x1xf32>
    %cst_15 = arith.constant 1.000000e-30 : f32
    %29 = vector.broadcast %cst_15 : f32 to vector<32x1xf32>
    %30 = arith.maximumf %28, %29 : vector<32x1xf32>
    %31 = tpu.reciprocal %30 {approx = true} : vector<32x1xf32> -> vector<32x1xf32>
    %cst_16 = arith.constant dense<0.000000e+00> : vector<32x8xf32>
    %32 = tpu.matmul %26, %8, %cst_16 {dimension_numbers = #tpu.dot_dimension_numbers<[1], [0], [0], [1], [0, 0, 1, 1], [], []>} : vector<32x32xf32>, vector<32x8xf32>, vector<32x8xf32> -> vector<32x8xf32>
    %33 = vector.broadcast %31 : vector<32x1xf32> to vector<32x8xf32>
    %34 = arith.mulf %32, %33 : vector<32x8xf32>
    %cst_17 = arith.constant 1.000000e+00 : f32
    %35 = vector.broadcast %cst_17 : f32 to vector<32x8xf32>
    %36 = arith.mulf %34, %35 : vector<32x8xf32>
    %cst_18 = arith.constant dense<0xFF800000> : vector<32xf32>
    %37 = vector.multi_reduction <maximumf>, %36, %cst_18 [1] : vector<32x8xf32> to vector<32xf32>
    %38 = vector.shape_cast %37 : vector<32xf32> to vector<32x1xf32>
    %39 = vector.broadcast %38 : vector<32x1xf32> to vector<32x8xf32>
    %40 = arith.subf %36, %39 : vector<32x8xf32>
    %41 = math.exp %40 : vector<32x8xf32>
    %cst_19 = arith.constant dense<0.000000e+00> : vector<32xf32>
    %42 = vector.multi_reduction <add>, %41, %cst_19 [1] : vector<32x8xf32> to vector<32xf32>
    %43 = vector.shape_cast %42 : vector<32xf32> to vector<32x1xf32>
    %44 = math.log %43 : vector<32x1xf32>
    %45 = vector.broadcast %44 : vector<32x1xf32> to vector<32x8xf32>
    %46 = arith.subf %40, %45 : vector<32x8xf32>
    %c0_20 = arith.constant 0 : index
    %c0_21 = arith.constant 0 : index
    %47 = vector.load %arg5[%c0_20, %c0_21] : memref<32x8xf32, #tpu.memory_space<vmem>>, vector<32x8xf32>
    tpu.vector_store %arg5[%c0_20, %c0_21], %46 {strides = array<i32>} : memref<32x8xf32, #tpu.memory_space<vmem>>, vector<32x8xf32>,
    return
  }
  func.func @transform_0(%arg0: i32) -> (i32, i32) {
    %c0_i32 = arith.constant 0 : i32
    %c0_i32_0 = arith.constant 0 : i32
    %c0_i32_1 = arith.constant 0 : i32
    return %c0_i32, %c0_i32_0 : i32, i32
  }
  func.func @transform_1(%arg0: i32) -> (i32, i32) {
    %c0_i32 = arith.constant 0 : i32
    %c0_i32_0 = arith.constant 0 : i32
    %c0_i32_1 = arith.constant 0 : i32
    return %c0_i32, %c0_i32_0 : i32, i32
  }
  func.func @transform_2(%arg0: i32) -> (i32, i32) {
    %c0_i32 = arith.constant 0 : i32
    %c0_i32_0 = arith.constant 0 : i32
    %c0_i32_1 = arith.constant 0 : i32
    return %c0_i32, %c0_i32_0 : i32, i32
  }
  func.func @transform_3(%arg0: i32) -> (i32, i32) {
    %c0_i32 = arith.constant 0 : i32
    %c0_i32_0 = arith.constant 0 : i32
    %c0_i32_1 = arith.constant 0 : i32
    return %c0_i32, %c0_i32_0 : i32, i32
  }
  func.func @transform_4(%arg0: i32) -> (i32, i32) {
    %c0_i32 = arith.constant 0 : i32
    %c0_i32_0 = arith.constant 0 : i32
    %c0_i32_1 = arith.constant 0 : i32
    return %c0_i32, %c0_i32_0 : i32, i32
  }
}

</mosaic_0001>

<bundles_post_ra>
// kernel: gat_forward.3
= control target key start
LH: loop header
LB: loop body
LE: loop exit
PB: predicated region body
PF: predicated region fallthrough
CT: control target
= control target key end

     0   :  { %vm31_vm0 = vcmask 130048   ;;  %v836_v4 = vmov 32   ;;  %v837_v7 = vmov 0.0|0.0   ;;  %vm838_vm2 = vmmov 0   ;;  %s842_s8 = smov 16   ;;  %s1030_s2 = inlined_call_operand.vmem [shape: f32[16,34], index: 2, kind: input, shape index: {}]   ;;  %s1031_s1 = inlined_call_operand.vmem [shape: f32[32,16], index: 1, kind: input, shape index: {}]   ;;  %s1032_s3 = inlined_call_operand.vmem [shape: f32[2,16], index: 3, kind: input, shape index: {}]   ;;  %s1033_s0 = inlined_call_operand.vmem [shape: f32[32,32], index: 0, kind: input, shape index: {}]   ;;  %s1034_s4 = inlined_call_operand.vmem [shape: f32[32,32], index: 4, kind: output, shape index: {}]  }
   0x1   :  { %v29_v0 = vld [vmem:[%s1030_s2] sm:$0xff]  ;;  %v30_v1 = vld [vmem:[%s1030_s2 + $0x8] sm:$0xff]  ;;  %782 = vset.pattern.permute.xlu0 %v836_v4  ;;  %784 = vset.pattern.permute.xlu1 %v836_v4  ;;  %v19_v6 = vld [vmem:[%s1031_s1 + $0x10] sm:$0xff]  ;;  %v839_v10 = vmov 0.0   ;;  %v840_v21 = vmov 33   ;;  %v223_v24 = vlaneseq  ;;  %vm247_vm5 = vcmask 261120  }
   0x2   :  { %v17_v2 = vld [vmem:[%s1031_s1] sm:$0xff]  ;;  %v747_v3 = vpack.c.bf16 %v30_v1, %v29_v0  ;;  %v18_v5 = vld [vmem:[%s1031_s1 + $0x8] sm:$0xff]  ;;  %v20_v8 = vld [vmem:[%s1031_s1 + $0x18] sm:$0xff] }
   0x3   :  { %702 = vmatprep.mubr.msk.f32.mxu1 %vm31_vm0, %v17_v2  ;;  %v752_v9 = vpack.c.bf16 %v18_v5, %v17_v2  ;;  %vm753_vm1 = vmpackc.low %vm31_vm0, %vm31_vm0  ;;  %v756_v11 = vpack.c.bf16 %v20_v8, %v19_v6  ;;  %v129_v12 = vld [vmem:[%s1032_s3] sm:$0x3]  ;;  %v224_v25 = vshrl.u32 %v223_v24, 7  ;;  %v923_v29 = vld [vmem:[%s1033_s0 + $0x8] sm:$0xff] }
   0x4   :  { %748 = vmatprep.subr.bf16.mxu1 %v747_v3  ;;  %vm26_vm3 = vcmp.gt.f32.partialorder %v923_v29, 0.0  ;;  %v935_v43 = vld [vmem:[%s1033_s0] sm:$0xff]  ;;  %v940_v45 = vld [vmem:[%s1033_s0 + $0x10] sm:$0xff] }
   0x5   :  { %750 = vmatpush3.bf16.msra.mxu1 %v747_v3  ;;  %v225_v26 = vsub.s32 0, %v224_v25  ;;  %v415_v31 = vsub.s32 1, %v224_v25  ;;  %vm25_vm8 = vcmp.gt.f32.partialorder %v935_v43, 0.0  ;;  %vm27_vm9 = vcmp.gt.f32.partialorder %v940_v45, 0.0  ;;  %v955_v3 = vld [vmem:[%s1033_s0 + $0x18] sm:$0xff]  ;;  %s841_s0 = smov 112  }
   0x6   :  { %751 = vmatprep.subr.bf16.mxu1 %v837_v7  ;;  %vm28_vm14 = vcmp.gt.f32.partialorder %v955_v3, 0.0 }
   0x8   :  { %703 = vmatmul.mubr.msk.f32.vlgmr.msra.gmra.mrb[0].mxu1 %vm31_vm0, %v18_v5 }
   0x9   :  { %705 = vmatprep.mubr.msk.f32.mxu1 %vm31_vm0, %v19_v6 }
   0xc   :  { %706 = vmatmul.mubr.msk.f32.gmra.mrb[2].mxu1 %vm31_vm0, %v20_v8 }
   0xd   :  { %716 = vmatprep.mubr.msk.f32.mxu1 %vm838_vm2, %v839_v10 }
   0xe   :  { %754 = vmatpush3.bf16.xpose.msk.msra.mxu1 %vm753_vm1, %v752_v9 }
   0xf   :  { %755 = vmatprep.subr.bf16.mxu1 %v837_v7 }
  0x16   :  { %758 = vmatpush3.bf16.xpose.msk.msra.mxu1 %vm753_vm1, %v756_v11 }
  0x1d   :  { %717 = vmatmul.mubr.msk.f32.vlgmr.msra.gmra.mrb[4].mxu1 %vm31_vm0, %v129_v12 }
  0xdb   :  { %v896_v13 = vpop.f32.mrb[0].mxu1 }
  0xdc   :  { %210 = vperm.xlu0 %782, %v896_v13   ;;  %v899_v14 = vpop.f32.mrb[1].mxu1 }
  0xdd   :  { %v759_v15 = vpack.c.bf16 %v896_v13, %v899_v14  ;;  %v786_v16 = vpack.i.bf16 %v896_v13, %v899_v14 }
  0xdf   :  { %v905_v17 = vpop.f32.mrb[2].mxu1  ;;  %760 = vmatprep.subr.bf16.mxu0 %v759_v15 }
  0xe0   :  { %205 = vperm.xlu0 %782, %v899_v14   ;;  %762 = vmatpush3.bf16.msra.mxu0 %v759_v15  ;;  %v908_v18 = vpop.f32.mrb[3].mxu1 }
  0xe1   :  { %220 = vperm.xlu1 %784, %v905_v17   ;;  %v763_v19 = vpack.c.bf16 %v905_v17, %v908_v18  ;;  %v791_v20 = vpack.i.bf16 %v905_v17, %v908_v18 }
  0xe3   :  { %764 = vmatprep.subr.bf16.mxu0 %v763_v19 }
  0xe4   :  { %783 = vset.pattern.permute.xlu0 %v840_v21  ;;  %766 = vmatpush3.bf16.msra.mxu0 %v763_v19 }
  0xe5   :  { %215 = vperm.xlu1 %784, %v908_v18   ;;  %398 = vperm.xlu0 %783, %v899_v14  }
  0xe9   :  { %785 = vset.pattern.permute.xlu1 %v840_v21  ;;  %410 = vperm.xlu0 %783, %v905_v17  }
  0xea   :  { %402 = vperm.xlu1 %785, %v896_v13  }
  0xee   :  { %406 = vperm.xlu1 %785, %v908_v18  }
  0xf0   :  { %v199_v22 = vpop.f32.mrb[4].mxu1 }
  0xf1   :  { %v718_v23 = vpop.f32.mrb[5].mxu1  ;;  %v226_v27 = vrot.slane %v199_v22, %v225_v26  ;;  %v416_v36 = vrot.slane %v199_v22, %v415_v31 }
 0x15b   :  { %v211_v28 = vpop.permute.xlu0 %210 }
 0x15c   :  { %v228_v30 = vadd.f32 %v226_v27, %v211_v28 }
 0x15e   :  { %v236_v32 = vmul.f32 0.2, %v228_v30  ;;  %vm232_vm4 = vcmp.gt.f32.partialorder %v228_v30, 0.0 }
 0x15f   :  { %v206_v33 = vpop.permute.xlu0 %205 }
 0x160   :  { %v221_v34 = vpop.permute.xlu1 %220  ;;  %v240_v35 = vsel %vm232_vm4, %v228_v30, %v236_v32  ;;  %v227_v44 = vadd.f32 %v226_v27, %v206_v33 }
 0x161   :  { %v928_v37 = vsel %vm26_vm3, %v240_v35, -1e+30  ;;  %v230_v48 = vadd.f32 %v226_v27, %v221_v34 }
 0x162   :  { %v251_v38 = vsel %vm247_vm5, %v928_v37, -inf  ;;  %v235_v52 = vmul.f32 0.2, %v227_v44  ;;  %vm231_vm10 = vcmp.gt.f32.partialorder %v227_v44, 0.0 }
 0x163   :  { %252 = vmax.xlane.f32.xlu0 %v251_v38  ;;  %v238_v59 = vmul.f32 0.2, %v230_v48  ;;  %vm234_vm12 = vcmp.gt.f32.partialorder %v230_v48, 0.0 }
 0x164   :  { %v216_v39 = vpop.permute.xlu1 %215  ;;  %v399_v40 = vpop.permute.xlu0 %398  ;;  %v239_v0 = vsel %vm231_vm10, %v227_v44, %v235_v52 }
 0x165   :  { %v229_v41 = vadd.f32 %v226_v27, %v216_v39  ;;  %v417_v42 = vadd.f32 %v416_v36, %v399_v40  ;;  %v243_v6 = vsel %vm25_vm8, %v239_v0, -1e+30  ;;  %v242_v9 = vsel %vm234_vm12, %v230_v48, %v238_v59 }
 0x166   :  { %v248_v12 = vsel %vm247_vm5, %v243_v6, -inf  ;;  %v246_v15 = vsel %vm28_vm14, %v242_v9, -1e+30 }
 0x167   :  { %v237_v46 = vmul.f32 0.2, %v229_v41  ;;  %v425_v47 = vmul.f32 0.2, %v417_v42  ;;  %vm421_vm6 = vcmp.gt.f32.partialorder %v417_v42, 0.0  ;;  %vm233_vm7 = vcmp.gt.f32.partialorder %v229_v41, 0.0 }
 0x168   :  { %v411_v55 = vpop.permute.xlu0 %410  ;;  %v257_v21 = vsel %vm247_vm5, %v246_v15, -inf }
 0x169   :  { %v403_v49 = vpop.permute.xlu1 %402  ;;  %v429_v50 = vsel %vm421_vm6, %v417_v42, %v425_v47  ;;  %v241_v51 = vsel %vm233_vm7, %v229_v41, %v237_v46  ;;  %v420_v61 = vadd.f32 %v416_v36, %v411_v55 }
 0x16a   :  { %v418_v53 = vadd.f32 %v416_v36, %v403_v49  ;;  %v433_v54 = vsel %vm25_vm8, %v429_v50, -1e+30  ;;  %v245_v58 = vsel %vm27_vm9, %v241_v51, -1e+30 }
 0x16b   :  { %v437_v56 = vsel %vm247_vm5, %v433_v54, -inf  ;;  %v254_v2 = vsel %vm247_vm5, %v245_v58, -inf  ;;  %v428_v7 = vmul.f32 0.2, %v420_v61  ;;  %vm424_vm15 = vcmp.gt.f32.partialorder %v420_v61, 0.0 }
 0x16c   :  { %v426_v57 = vmul.f32 0.2, %v418_v53  ;;  %438 = vmax.xlane.f32.xlu0 %v437_v56  ;;  %vm422_vm11 = vcmp.gt.f32.partialorder %v418_v53, 0.0 }
 0x16d   :  { %v407_v60 = vpop.permute.xlu1 %406  ;;  %v432_v19 = vsel %vm424_vm15, %v420_v61, %v428_v7 }
 0x16e   :  { %v419_v62 = vadd.f32 %v416_v36, %v407_v60  ;;  %v430_v63 = vsel %vm422_vm11, %v418_v53, %v426_v57  ;;  %v436_v22 = vsel %vm28_vm14, %v432_v19, -1e+30 }
 0x16f   :  { %v434_v1 = vsel %vm26_vm3, %v430_v63, -1e+30  ;;  %v446_v23 = vsel %vm247_vm5, %v436_v22, -inf }
 0x170   :  { %v427_v4 = vmul.f32 0.2, %v419_v62  ;;  %v440_v5 = vsel %vm247_vm5, %v434_v1, -inf  ;;  %255 = vmax.xlane.f32.xlu0 %v254_v2  ;;  %vm423_vm13 = vcmp.gt.f32.partialorder %v419_v62, 0.0 }
 0x171   :  { %441 = vmax.xlane.f32.xlu1 %v440_v5 }
 0x172   :  { %v431_v8 = vsel %vm423_vm13, %v419_v62, %v427_v4 }
 0x173   :  { %v435_v10 = vsel %vm27_vm9, %v431_v8, -1e+30 }
 0x174   :  { %v443_v11 = vsel %vm247_vm5, %v435_v10, -inf }
 0x175   :  { %444 = vmax.xlane.f32.xlu0 %v443_v11  ;;  %249 = vmax.xlane.f32.xlu1 %v248_v12 }
 0x179   :  { %258 = vmax.xlane.f32.xlu1 %v257_v21 }
 0x17d   :  { %447 = vmax.xlane.f32.xlu1 %v446_v23 }
 0x18b   :  { %787 = vrot.lane.b32.xlu0 %v786_v16, %s841_s0 }
 0x18e   :  { %792 = vrot.lane.b32.xlu1 %v791_v20, %s841_s0 }
 0x1f0   :  { %v253_v24 = vpop.xlane.xlu0 %252 }
 0x1f1   :  { %v261_v28 = vsub.f32 %v928_v37, %v253_v24 }
 0x1f3   :  { %v266_v34 = vmul.f32 1.442695, %v261_v28 }
 0x1f9   :  { %v439_v25 = vpop.xlane.xlu0 %438 }
 0x1fa   :  { %v449_v26 = vsub.f32 %v433_v54, %v439_v25 }
 0x1fc   :  { %v453_v27 = vmul.f32 1.442695, %v449_v26 }
 0x1fd   :  { %v256_v30 = vpop.xlane.xlu0 %255 }
 0x1fe   :  { %796 = vpow2.f32 %v453_v27  ;;  %v442_v31 = vpop.xlane.xlu1 %441  ;;  %v262_v32 = vsub.f32 %v245_v58, %v256_v30 }
 0x1ff   :  { %v450_v33 = vsub.f32 %v434_v1, %v442_v31 }
 0x200   :  { %v268_v36 = vmul.f32 1.442695, %v262_v32 }
 0x201   :  { %v455_v35 = vmul.f32 1.442695, %v450_v33 }
 0x202   :  { %v445_v13 = vpop.xlane.xlu0 %444  ;;  %v250_v14 = vpop.xlane.xlu1 %249 }
 0x203   :  { %798 = vpow2.f32 %v455_v35  ;;  %v451_v16 = vsub.f32 %v435_v10, %v445_v13  ;;  %v260_v17 = vsub.f32 %v243_v6, %v250_v14 }
 0x204   :  { %800 = vpow2.f32 %v266_v34 }
 0x205   :  { %v457_v18 = vmul.f32 1.442695, %v451_v16  ;;  %v264_v20 = vmul.f32 1.442695, %v260_v17  ;;  %802 = vpow2.f32 %v268_v36 }
 0x206   :  { %v788_v38 = vpop.permute.xlu0 %787  ;;  %v259_v39 = vpop.xlane.xlu1 %258 }
 0x207   :  { %804 = vpow2.f32 %v457_v18  ;;  %v790_v37 = vunpack.i.h.bf16 %v788_v38  ;;  %v789_v40 = vunpack.i.l.bf16 %v788_v38  ;;  %v263_v41 = vsub.f32 %v246_v15, %v259_v39 }
 0x208   :  { %v797_v42 = vpop.eup %796  ;;  %806 = vpow2.f32 %v264_v20 }
 0x209   :  { %v767_v44 = vpack.c.bf16 %v790_v37, %v789_v40  ;;  %v270_v46 = vmul.f32 1.442695, %v263_v41  ;;  %v461_v47 = vsel %vm25_vm8, %v797_v42, 0.0 }
 0x20a   :  { %v448_v48 = vpop.xlane.xlu1 %447  ;;  %v465_v49 = vsel %vm247_vm5, %v461_v47, 0.0 }
 0x20b   :  { %808 = vpow2.f32 %v270_v46  ;;  %v452_v50 = vsub.f32 %v436_v22, %v448_v48  ;;  %768 = vmatprep.subr.bf16.mxu0 %v767_v44  ;;  %466 = vadd.xlane.f32.xlu1 %v465_v49 }
 0x20d   :  { %v799_v51 = vpop.eup %798  ;;  %v459_v52 = vmul.f32 1.442695, %v452_v50 }
 0x20e   :  { %v793_v53 = vpop.permute.xlu1 %792  ;;  %v462_v54 = vsel %vm26_vm3, %v799_v51, 0.0  ;;  %v801_v55 = vpop.eup %800 }
 0x20f   :  { %810 = vpow2.f32 %v459_v52  ;;  %v468_v56 = vsel %vm247_vm5, %v462_v54, 0.0  ;;  %v803_v57 = vpop.eup %802  ;;  %v795_v59 = vunpack.i.h.bf16 %v793_v53  ;;  %v794_v60 = vunpack.i.l.bf16 %v793_v53 }
 0x210   :  { %469 = vadd.xlane.f32.xlu0 %v468_v56  ;;  %v273_v1 = vsel %vm26_vm3, %v801_v55, 0.0  ;;  %v274_v5 = vsel %vm27_vm9, %v803_v57, 0.0 }
 0x211   :  { %v805_v58 = vpop.eup %804  ;;  %v771_v4 = vpack.c.bf16 %v795_v59, %v794_v60  ;;  %v282_v45 = vsel %vm247_vm5, %v274_v5, 0.0  ;;  %v279_v9 = vsel %vm247_vm5, %v273_v1, 0.0 }
 0x212   :  { %v807_v61 = vpop.eup %806  ;;  %v463_v62 = vsel %vm27_vm9, %v805_v58, 0.0 }
 0x213   :  { %v272_v63 = vsel %vm25_vm8, %v807_v61, 0.0  ;;  %v471_v0 = vsel %vm247_vm5, %v463_v62, 0.0 }
 0x214   :  { %727 = vmatprep.mubr.msk.f32.mxu0 %vm247_vm5, %v272_v63  ;;  %472 = vadd.xlane.f32.xlu0 %v471_v0  ;;  %v276_v6 = vsel %vm247_vm5, %v272_v63, 0.0 }
 0x215   :  { %v809_v2 = vpop.eup %808  ;;  %728 = vmatmul.mubr.msk.f32.vlgmr.msra.gmra.mrb[0].mxu0 %vm247_vm5, %v273_v1 }
 0x216   :  { %770 = vmatpush3.bf16.msra.mxu0 %v767_v44  ;;  %730 = vmatprep.mubr.msk.f32.mxu0 %vm247_vm5, %v274_v5  ;;  %v275_v43 = vsel %vm28_vm14, %v809_v2, 0.0 }
 0x217   :  { %772 = vmatprep.subr.bf16.mxu0 %v771_v4  ;;  %v285_v10 = vsel %vm247_vm5, %v275_v43, 0.0 }
 0x218   :  { %277 = vadd.xlane.f32.xlu0 %v276_v6 }
 0x219   :  { %v811_v7 = vpop.eup %810  ;;  %731 = vmatmul.mubr.msk.f32.gmra.mrb[2].mxu0 %vm247_vm5, %v275_v43 }
 0x21a   :  { %774 = vmatpush3.bf16.msra.mxu0 %v771_v4  ;;  %741 = vmatprep.mubr.msk.f32.mxu0 %vm247_vm5, %v461_v47  ;;  %v464_v29 = vsel %vm28_vm14, %v811_v7, 0.0 }
 0x21b   :  { %v474_v8 = vsel %vm247_vm5, %v464_v29, 0.0 }
 0x21c   :  { %283 = vadd.xlane.f32.xlu0 %v282_v45  ;;  %475 = vadd.xlane.f32.xlu1 %v474_v8 }
 0x21d   :  { %742 = vmatmul.mubr.msk.f32.vlgmr.msra.gmra.mrb[4].mxu0 %vm247_vm5, %v462_v54 }
 0x21e   :  { %744 = vmatprep.mubr.msk.f32.mxu0 %vm247_vm5, %v463_v62 }
 0x220   :  { %280 = vadd.xlane.f32.xlu1 %v279_v9 }
 0x221   :  { %745 = vmatmul.mubr.msk.f32.gmra.mrb[6].mxu0 %vm247_vm5, %v464_v29 }
 0x224   :  { %286 = vadd.xlane.f32.xlu1 %v285_v10 }
 0x298   :  { %v467_v11 = vpop.xlane.xlu1 %466 }
 0x299   :  { %v477_v15 = vmax.f32 %v467_v11, 1e-30 }
 0x29d   :  { %v470_v3 = vpop.xlane.xlu0 %469 }
 0x29e   :  { %v478_v12 = vmax.f32 %v470_v3, 1e-30 }
 0x2a0   :  { %812 = vrcp.f32 %v478_v12 }
 0x2a1   :  { %v473_v21 = vpop.xlane.xlu0 %472  ;;  %814 = vrcp.f32 %v477_v15 }
 0x2a2   :  { %v479_v23 = vmax.f32 %v473_v21, 1e-30 }
 0x2a5   :  { %v278_v18 = vpop.xlane.xlu0 %277 }
 0x2a6   :  { %v288_v39 = vmax.f32 %v278_v18, 1e-30 }
 0x2a9   :  { %v476_v19 = vpop.xlane.xlu1 %475  ;;  %v284_v37 = vpop.xlane.xlu0 %283 }
 0x2aa   :  { %v480_v22 = vmax.f32 %v476_v19, 1e-30  ;;  %v813_v28 = vpop.eup %812  ;;  %v290_v41 = vmax.f32 %v284_v37, 1e-30 }
 0x2ab   :  { %v815_v31 = vpop.eup %814 }
 0x2ac   :  { %816 = vrcp.f32 %v480_v22 }
 0x2ad   :  { %818 = vrcp.f32 %v479_v23  ;;  %v281_v20 = vpop.xlane.xlu1 %280 }
 0x2ae   :  { %v289_v38 = vmax.f32 %v281_v20, 1e-30 }
 0x2b0   :  { %820 = vrcp.f32 %v289_v38 }
 0x2b1   :  { %v287_v40 = vpop.xlane.xlu1 %286  ;;  %822 = vrcp.f32 %v288_v39 }
 0x2b2   :  { %v291_v42 = vmax.f32 %v287_v40, 1e-30  ;;  %824 = vrcp.f32 %v290_v41 }
 0x2b4   :  { %826 = vrcp.f32 %v291_v42 }
 0x2b6   :  { %v817_v35 = vpop.eup %816 }
 0x2b7   :  { %v819_v13 = vpop.eup %818 }
 0x2ba   :  { %v821_v44 = vpop.eup %820 }
 0x2bb   :  { %v823_v46 = vpop.eup %822 }
 0x2bc   :  { %v825_v52 = vpop.eup %824 }
 0x2be   :  { %v827_v55 = vpop.eup %826 }
 0x2e8   :  { %v729_v24 = vpop.f32.mrb[0].mxu0 }
 0x2e9   :  { %v374_v25 = vpop.f32.mrb[1].mxu0  ;;  %v394_v47 = vmul.f32 %v821_v44, %v729_v24 }
 0x2ea   :  { %v393_v48 = vmul.f32 %v823_v46, %v374_v25 }
 0x2ec   :  { %v732_v26 = vpop.f32.mrb[2].mxu0 }
 0x2ed   :  { %v384_v27 = vpop.f32.mrb[3].mxu0  ;;  %v396_v57 = vmul.f32 %v827_v55, %v732_v26 }
 0x2ee   :  { %v395_v58 = vmul.f32 %v825_v52, %v384_v27 }
 0x2f0   :  { %v743_v30 = vpop.f32.mrb[4].mxu0 }
 0x2f1   :  { %v595_v32 = vmul.f32 %v813_v28, %v743_v30  ;;  %v575_v33 = vpop.f32.mrb[5].mxu0 }
 0x2f2   :  { %v594_v34 = vmul.f32 %v815_v31, %v575_v33 }
 0x2f3   :  { %604 = vrot.lane.b32.xlu1 %v595_v32, %s842_s8 }
 0x2f4   :  { %602 = vrot.lane.b32.xlu0 %v594_v34, %s842_s8  ;;  %v746_v36 = vpop.f32.mrb[6].mxu0 }
 0x2f5   :  { %v597_v14 = vmul.f32 %v817_v35, %v746_v36  ;;  %v585_v16 = vpop.f32.mrb[7].mxu0 }
 0x2f6   :  { %v596_v17 = vmul.f32 %v819_v13, %v585_v16 }
 0x2f8   :  { %608 = vrot.lane.b32.xlu0 %v597_v14, %s842_s8  ;;  %606 = vrot.lane.b32.xlu1 %v596_v17, %s842_s8 }
 0x365   :  { %v605_v49 = vpop.permute.xlu1 %604 }
 0x366   :  { %v615_v50 = vsel %vm31_vm0, %v394_v47, %v605_v49  ;;  %v603_v51 = vpop.permute.xlu0 %602 }
 0x367   :  { %v623_v53 = vmin.f32 %v615_v50, 0.0  ;;  %v614_v54 = vsel %vm31_vm0, %v393_v48, %v603_v51  ;;  %vm619_vm1 = vcmp.gt.f32.partialorder %v615_v50, 0.0 }
 0x368   :  { %v622_v56 = vmin.f32 %v614_v54, 0.0  ;;  %vm618_vm2 = vcmp.gt.f32.partialorder %v614_v54, 0.0 }
 0x369   :  { %v628_v59 = vmul.f32 1.442695, %v623_v53 }
 0x36a   :  { %v626_v60 = vmul.f32 1.442695, %v622_v56  ;;  %v609_v61 = vpop.permute.xlu0 %608  ;;  %v607_v62 = vpop.permute.xlu1 %606 }
 0x36b   :  { %828 = vpow2.f32 %v628_v59  ;;  %v617_v63 = vsel %vm31_vm0, %v396_v57, %v609_v61  ;;  %v616_v0 = vsel %vm31_vm0, %v395_v58, %v607_v62 }
 0x36c   :  { %830 = vpow2.f32 %v626_v60  ;;  %v625_v1 = vmin.f32 %v617_v63, 0.0  ;;  %v624_v2 = vmin.f32 %v616_v0, 0.0  ;;  %vm621_vm0 = vcmp.gt.f32.partialorder %v617_v63, 0.0 }
 0x36d   :  { %vm620_vm3 = vcmp.gt.f32.partialorder %v616_v0, 0.0 }
 0x36e   :  { %v632_v4 = vmul.f32 1.442695, %v625_v1  ;;  %v630_v5 = vmul.f32 1.442695, %v624_v2 }
 0x370   :  { %832 = vpow2.f32 %v632_v4 }
 0x371   :  { %834 = vpow2.f32 %v630_v5 }
 0x375   :  { %v829_v43 = vpop.eup %828 }
 0x376   :  { %v831_v6 = vpop.eup %830  ;;  %v668_v7 = vadd.f32 -1.0, %v829_v43 }
 0x377   :  { %v667_v29 = vadd.f32 -1.0, %v831_v6 }
 0x378   :  { %v639_v45 = vsel %vm619_vm1, %v615_v50, %v668_v7 }
 0x379   :  { %643 = vst.msk [vmem:[%s1034_s4 + $0x8] sm:$0xff] %vm247_vm5, %v639_v45  ;;  %v638_v8 = vsel %vm618_vm2, %v614_v54, %v667_v29 }
 0x37a   :  { %v833_v9 = vpop.eup %832  ;;  %642 = vst.msk [vmem:[%s1034_s4] sm:$0xff] %vm247_vm5, %v638_v8 }
 0x37b   :  { %v835_v10 = vpop.eup %834  ;;  %v670_v3 = vadd.f32 -1.0, %v833_v9 }
 0x37c   :  { %v669_v11 = vadd.f32 -1.0, %v835_v10 }
 0x37d   :  { %v641_v12 = vsel %vm621_vm0, %v617_v63, %v670_v3 }
 0x37e   :  { %645 = vst.msk [vmem:[%s1034_s4 + $0x18] sm:$0xff] %vm247_vm5, %v641_v12  ;;  %v640_v15 = vsel %vm620_vm3, %v616_v0, %v669_v11 }
 0x37f   :  { %644 = vst.msk [vmem:[%s1034_s4 + $0x10] sm:$0xff] %vm247_vm5, %v640_v15 }

// kernel: gat_forward.4
= control target key start
LH: loop header
LB: loop body
LE: loop exit
PB: predicated region body
PF: predicated region fallthrough
CT: control target
= control target key end

     0   :  { %vm33_vm0 = vcmask 261120   ;;  %v848_v6 = vmov 32   ;;  %v849_v10 = vmov 0.0|0.0   ;;  %vm850_vm2 = vmmov 0   ;;  %s854_s12 = smov 16   ;;  %s1048_s2 = inlined_call_operand.vmem [shape: f32[32,34], index: 2, kind: input, shape index: {}]   ;;  %s1049_s1 = inlined_call_operand.vmem [shape: f32[32,32], index: 1, kind: input, shape index: {}]   ;;  %s1050_s3 = inlined_call_operand.vmem [shape: f32[2,32], index: 3, kind: input, shape index: {}]   ;;  %s1051_s0 = inlined_call_operand.vmem [shape: f32[32,32], index: 0, kind: input, shape index: {}]   ;;  %s1052_s4 = inlined_call_operand.vmem [shape: f32[32,32], index: 4, kind: output, shape index: {}]  }
   0x1   :  { %v29_v0 = vld [vmem:[%s1048_s2] sm:$0xff]  ;;  %v30_v1 = vld [vmem:[%s1048_s2 + $0x8] sm:$0xff]  ;;  %v31_v2 = vld [vmem:[%s1048_s2 + $0x10] sm:$0xff]  ;;  %794 = vset.pattern.permute.xlu0 %v848_v6  ;;  %796 = vset.pattern.permute.xlu1 %v848_v6  ;;  %v851_v13 = vmov 0.0   ;;  %v852_v24 = vmov 33   ;;  %v225_v27 = vlaneseq  ;;  %vm615_vm15 = vcmask 130048  }
   0x2   :  { %v755_v3 = vpack.c.bf16 %v30_v1, %v29_v0  ;;  %v32_v4 = vld [vmem:[%s1048_s2 + $0x18] sm:$0xff]  ;;  %v17_v5 = vld [vmem:[%s1049_s1] sm:$0xff]  ;;  %v18_v8 = vld [vmem:[%s1049_s1 + $0x8] sm:$0xff] }
   0x3   :  { %v759_v7 = vpack.c.bf16 %v32_v4, %v31_v2  ;;  %710 = vmatprep.mubr.msk.f32.mxu1 %vm33_vm0, %v17_v5  ;;  %v19_v9 = vld [vmem:[%s1049_s1 + $0x10] sm:$0xff]  ;;  %v20_v11 = vld [vmem:[%s1049_s1 + $0x18] sm:$0xff]  ;;  %v764_v12 = vpack.c.bf16 %v18_v8, %v17_v5  ;;  %vm765_vm1 = vmpackc.low %vm33_vm0, %vm33_vm0  ;;  %v226_v28 = vshrl.u32 %v225_v27, 7 }
   0x4   :  { %756 = vmatprep.subr.bf16.mxu1 %v755_v3  ;;  %v768_v14 = vpack.c.bf16 %v20_v11, %v19_v9  ;;  %v131_v15 = vld [vmem:[%s1050_s3] sm:$0x3]  ;;  %v941_v32 = vld [vmem:[%s1051_s0 + $0x8] sm:$0xff]  ;;  %v958_v48 = vld [vmem:[%s1051_s0 + $0x10] sm:$0xff] }
   0x5   :  { %758 = vmatpush3.bf16.msra.mxu1 %v755_v3  ;;  %v227_v29 = vsub.s32 0, %v226_v28  ;;  %v416_v34 = vsub.s32 1, %v226_v28  ;;  %vm26_vm3 = vcmp.gt.f32.partialorder %v941_v32, 0.0  ;;  %v953_v46 = vld [vmem:[%s1051_s0] sm:$0xff]  ;;  %vm27_vm8 = vcmp.gt.f32.partialorder %v958_v48, 0.0  ;;  %v973_v6 = vld [vmem:[%s1051_s0 + $0x18] sm:$0xff] }
   0x6   :  { %760 = vmatprep.subr.bf16.mxu1 %v759_v7  ;;  %vm25_vm7 = vcmp.gt.f32.partialorder %v953_v46, 0.0  ;;  %vm28_vm13 = vcmp.gt.f32.partialorder %v973_v6, 0.0  ;;  %s853_s0 = smov 112  }
   0x9   :  { %762 = vmatpush3.bf16.msra.mxu1 %v759_v7 }
   0xa   :  { %763 = vmatprep.subr.bf16.mxu1 %v849_v10 }
   0xc   :  { %711 = vmatmul.mubr.msk.f32.vlgmr.msra.gmra.mrb[0].mxu1 %vm33_vm0, %v18_v8 }
   0xd   :  { %713 = vmatprep.mubr.msk.f32.mxu1 %vm33_vm0, %v19_v9 }
  0x10   :  { %714 = vmatmul.mubr.msk.f32.gmra.mrb[2].mxu1 %vm33_vm0, %v20_v11 }
  0x11   :  { %724 = vmatprep.mubr.msk.f32.mxu1 %vm850_vm2, %v851_v13 }
  0x12   :  { %766 = vmatpush3.bf16.xpose.msk.msra.mxu1 %vm765_vm1, %v764_v12 }
  0x13   :  { %767 = vmatprep.subr.bf16.mxu1 %v849_v10 }
  0x1a   :  { %770 = vmatpush3.bf16.xpose.msk.msra.mxu1 %vm765_vm1, %v768_v14 }
  0x21   :  { %725 = vmatmul.mubr.msk.f32.vlgmr.msra.gmra.mrb[4].mxu1 %vm33_vm0, %v131_v15 }
  0xdf   :  { %v914_v16 = vpop.f32.mrb[0].mxu1 }
  0xe0   :  { %212 = vperm.xlu0 %794, %v914_v16   ;;  %v917_v17 = vpop.f32.mrb[1].mxu1 }
  0xe1   :  { %v771_v18 = vpack.c.bf16 %v914_v16, %v917_v17  ;;  %v798_v19 = vpack.i.bf16 %v914_v16, %v917_v17 }
  0xe3   :  { %v923_v20 = vpop.f32.mrb[2].mxu1  ;;  %772 = vmatprep.subr.bf16.mxu0 %v771_v18 }
  0xe4   :  { %207 = vperm.xlu0 %794, %v917_v17   ;;  %774 = vmatpush3.bf16.msra.mxu0 %v771_v18  ;;  %v926_v21 = vpop.f32.mrb[3].mxu1 }
  0xe5   :  { %222 = vperm.xlu1 %796, %v923_v20   ;;  %v775_v22 = vpack.c.bf16 %v923_v20, %v926_v21  ;;  %v803_v23 = vpack.i.bf16 %v923_v20, %v926_v21 }
  0xe7   :  { %776 = vmatprep.subr.bf16.mxu0 %v775_v22 }
  0xe8   :  { %795 = vset.pattern.permute.xlu0 %v852_v24  ;;  %778 = vmatpush3.bf16.msra.mxu0 %v775_v22 }
  0xe9   :  { %217 = vperm.xlu1 %796, %v926_v21   ;;  %399 = vperm.xlu0 %795, %v917_v17  }
  0xed   :  { %797 = vset.pattern.permute.xlu1 %v852_v24  ;;  %411 = vperm.xlu0 %795, %v923_v20  }
  0xee   :  { %403 = vperm.xlu1 %797, %v914_v16  }
  0xf2   :  { %407 = vperm.xlu1 %797, %v926_v21  }
  0xf4   :  { %v201_v25 = vpop.f32.mrb[4].mxu1 }
  0xf5   :  { %v726_v26 = vpop.f32.mrb[5].mxu1  ;;  %v228_v30 = vrot.slane %v201_v25, %v227_v29  ;;  %v417_v39 = vrot.slane %v201_v25, %v416_v34 }
 0x15f   :  { %v213_v31 = vpop.permute.xlu0 %212 }
 0x160   :  { %v230_v33 = vadd.f32 %v228_v30, %v213_v31 }
 0x162   :  { %v238_v35 = vmul.f32 0.2, %v230_v33  ;;  %vm234_vm4 = vcmp.gt.f32.partialorder %v230_v33, 0.0 }
 0x163   :  { %v208_v36 = vpop.permute.xlu0 %207 }
 0x164   :  { %v223_v37 = vpop.permute.xlu1 %222  ;;  %v242_v38 = vsel %vm234_vm4, %v230_v33, %v238_v35  ;;  %v229_v47 = vadd.f32 %v228_v30, %v208_v36 }
 0x165   :  { %v946_v40 = vsel %vm26_vm3, %v242_v38, -1e+30  ;;  %v232_v51 = vadd.f32 %v228_v30, %v223_v37 }
 0x166   :  { %v252_v41 = vsel %vm33_vm0, %v946_v40, -inf  ;;  %v237_v55 = vmul.f32 0.2, %v229_v47  ;;  %vm233_vm9 = vcmp.gt.f32.partialorder %v229_v47, 0.0 }
 0x167   :  { %253 = vmax.xlane.f32.xlu0 %v252_v41  ;;  %v240_v62 = vmul.f32 0.2, %v232_v51  ;;  %vm236_vm11 = vcmp.gt.f32.partialorder %v232_v51, 0.0 }
 0x168   :  { %v218_v42 = vpop.permute.xlu1 %217  ;;  %v400_v43 = vpop.permute.xlu0 %399  ;;  %v241_v3 = vsel %vm233_vm9, %v229_v47, %v237_v55 }
 0x169   :  { %v231_v44 = vadd.f32 %v228_v30, %v218_v42  ;;  %v418_v45 = vadd.f32 %v417_v39, %v400_v43  ;;  %v245_v9 = vsel %vm25_vm7, %v241_v3, -1e+30  ;;  %v244_v12 = vsel %vm236_vm11, %v232_v51, %v240_v62 }
 0x16a   :  { %v249_v15 = vsel %vm33_vm0, %v245_v9, -inf  ;;  %v248_v18 = vsel %vm28_vm13, %v244_v12, -1e+30 }
 0x16b   :  { %v239_v49 = vmul.f32 0.2, %v231_v44  ;;  %v426_v50 = vmul.f32 0.2, %v418_v45  ;;  %vm422_vm5 = vcmp.gt.f32.partialorder %v418_v45, 0.0  ;;  %vm235_vm6 = vcmp.gt.f32.partialorder %v231_v44, 0.0 }
 0x16c   :  { %v412_v58 = vpop.permute.xlu0 %411  ;;  %v258_v24 = vsel %vm33_vm0, %v248_v18, -inf }
 0x16d   :  { %v404_v52 = vpop.permute.xlu1 %403  ;;  %v430_v53 = vsel %vm422_vm5, %v418_v45, %v426_v50  ;;  %v243_v54 = vsel %vm235_vm6, %v231_v44, %v239_v49  ;;  %v421_v0 = vadd.f32 %v417_v39, %v412_v58 }
 0x16e   :  { %v419_v56 = vadd.f32 %v417_v39, %v404_v52  ;;  %v434_v57 = vsel %vm25_vm7, %v430_v53, -1e+30  ;;  %v247_v61 = vsel %vm27_vm8, %v243_v54, -1e+30 }
 0x16f   :  { %v438_v59 = vsel %vm33_vm0, %v434_v57, -inf  ;;  %v255_v5 = vsel %vm33_vm0, %v247_v61, -inf  ;;  %v429_v10 = vmul.f32 0.2, %v421_v0  ;;  %vm425_vm14 = vcmp.gt.f32.partialorder %v421_v0, 0.0 }
 0x170   :  { %v427_v60 = vmul.f32 0.2, %v419_v56  ;;  %439 = vmax.xlane.f32.xlu0 %v438_v59  ;;  %vm423_vm10 = vcmp.gt.f32.partialorder %v419_v56, 0.0 }
 0x171   :  { %v408_v63 = vpop.permute.xlu1 %407  ;;  %v433_v22 = vsel %vm425_vm14, %v421_v0, %v429_v10 }
 0x172   :  { %v420_v1 = vadd.f32 %v417_v39, %v408_v63  ;;  %v431_v2 = vsel %vm423_vm10, %v419_v56, %v427_v60  ;;  %v437_v25 = vsel %vm28_vm13, %v433_v22, -1e+30 }
 0x173   :  { %v435_v4 = vsel %vm26_vm3, %v431_v2, -1e+30  ;;  %v447_v26 = vsel %vm33_vm0, %v437_v25, -inf }
 0x174   :  { %v428_v7 = vmul.f32 0.2, %v420_v1  ;;  %v441_v8 = vsel %vm33_vm0, %v435_v4, -inf  ;;  %256 = vmax.xlane.f32.xlu0 %v255_v5  ;;  %vm424_vm12 = vcmp.gt.f32.partialorder %v420_v1, 0.0 }
 0x175   :  { %442 = vmax.xlane.f32.xlu1 %v441_v8 }
 0x176   :  { %v432_v11 = vsel %vm424_vm12, %v420_v1, %v428_v7 }
 0x177   :  { %v436_v13 = vsel %vm27_vm8, %v432_v11, -1e+30 }
 0x178   :  { %v444_v14 = vsel %vm33_vm0, %v436_v13, -inf }
 0x179   :  { %445 = vmax.xlane.f32.xlu0 %v444_v14  ;;  %250 = vmax.xlane.f32.xlu1 %v249_v15 }
 0x17d   :  { %259 = vmax.xlane.f32.xlu1 %v258_v24 }
 0x181   :  { %448 = vmax.xlane.f32.xlu1 %v447_v26 }
 0x18f   :  { %799 = vrot.lane.b32.xlu0 %v798_v19, %s853_s0 }
 0x192   :  { %804 = vrot.lane.b32.xlu1 %v803_v23, %s853_s0 }
 0x1f4   :  { %v254_v27 = vpop.xlane.xlu0 %253 }
 0x1f5   :  { %v262_v31 = vsub.f32 %v946_v40, %v254_v27 }
 0x1f7   :  { %v267_v37 = vmul.f32 1.442695, %v262_v31 }
 0x1fd   :  { %v440_v28 = vpop.xlane.xlu0 %439 }
 0x1fe   :  { %v450_v29 = vsub.f32 %v434_v57, %v440_v28 }
 0x200   :  { %v454_v30 = vmul.f32 1.442695, %v450_v29 }
 0x201   :  { %v257_v33 = vpop.xlane.xlu0 %256 }
 0x202   :  { %808 = vpow2.f32 %v454_v30  ;;  %v443_v34 = vpop.xlane.xlu1 %442  ;;  %v263_v35 = vsub.f32 %v247_v61, %v257_v33 }
 0x203   :  { %v451_v36 = vsub.f32 %v435_v4, %v443_v34 }
 0x204   :  { %v269_v39 = vmul.f32 1.442695, %v263_v35 }
 0x205   :  { %v456_v38 = vmul.f32 1.442695, %v451_v36 }
 0x206   :  { %v446_v16 = vpop.xlane.xlu0 %445  ;;  %v251_v17 = vpop.xlane.xlu1 %250 }
 0x207   :  { %810 = vpow2.f32 %v456_v38  ;;  %v452_v19 = vsub.f32 %v436_v13, %v446_v16  ;;  %v261_v20 = vsub.f32 %v245_v9, %v251_v17 }
 0x208   :  { %812 = vpow2.f32 %v267_v37 }
 0x209   :  { %v458_v21 = vmul.f32 1.442695, %v452_v19  ;;  %v265_v23 = vmul.f32 1.442695, %v261_v20  ;;  %814 = vpow2.f32 %v269_v39 }
 0x20a   :  { %v800_v41 = vpop.permute.xlu0 %799  ;;  %v260_v42 = vpop.xlane.xlu1 %259 }
 0x20b   :  { %816 = vpow2.f32 %v458_v21  ;;  %v802_v40 = vunpack.i.h.bf16 %v800_v41  ;;  %v801_v43 = vunpack.i.l.bf16 %v800_v41  ;;  %v264_v44 = vsub.f32 %v248_v18, %v260_v42 }
 0x20c   :  { %v809_v45 = vpop.eup %808  ;;  %818 = vpow2.f32 %v265_v23 }
 0x20d   :  { %v779_v47 = vpack.c.bf16 %v802_v40, %v801_v43  ;;  %v271_v49 = vmul.f32 1.442695, %v264_v44  ;;  %v462_v50 = vsel %vm25_vm7, %v809_v45, 0.0 }
 0x20e   :  { %v449_v51 = vpop.xlane.xlu1 %448  ;;  %v466_v52 = vsel %vm33_vm0, %v462_v50, 0.0 }
 0x20f   :  { %820 = vpow2.f32 %v271_v49  ;;  %v453_v53 = vsub.f32 %v437_v25, %v449_v51  ;;  %780 = vmatprep.subr.bf16.mxu0 %v779_v47  ;;  %467 = vadd.xlane.f32.xlu1 %v466_v52 }
 0x211   :  { %v811_v54 = vpop.eup %810  ;;  %v460_v55 = vmul.f32 1.442695, %v453_v53 }
 0x212   :  { %v805_v56 = vpop.permute.xlu1 %804  ;;  %v463_v57 = vsel %vm26_vm3, %v811_v54, 0.0  ;;  %v813_v58 = vpop.eup %812 }
 0x213   :  { %822 = vpow2.f32 %v460_v55  ;;  %v469_v59 = vsel %vm33_vm0, %v463_v57, 0.0  ;;  %v815_v60 = vpop.eup %814  ;;  %v807_v62 = vunpack.i.h.bf16 %v805_v56  ;;  %v806_v63 = vunpack.i.l.bf16 %v805_v56 }
 0x214   :  { %470 = vadd.xlane.f32.xlu0 %v469_v59  ;;  %v274_v4 = vsel %vm26_vm3, %v813_v58, 0.0  ;;  %v275_v8 = vsel %vm27_vm8, %v815_v60, 0.0 }
 0x215   :  { %v817_v61 = vpop.eup %816  ;;  %v783_v7 = vpack.c.bf16 %v807_v62, %v806_v63  ;;  %v283_v48 = vsel %vm33_vm0, %v275_v8, 0.0  ;;  %v280_v12 = vsel %vm33_vm0, %v274_v4, 0.0 }
 0x216   :  { %v819_v0 = vpop.eup %818  ;;  %v464_v1 = vsel %vm27_vm8, %v817_v61, 0.0 }
 0x217   :  { %v273_v2 = vsel %vm25_vm7, %v819_v0, 0.0  ;;  %v472_v3 = vsel %vm33_vm0, %v464_v1, 0.0 }
 0x218   :  { %735 = vmatprep.mubr.msk.f32.mxu0 %vm33_vm0, %v273_v2  ;;  %473 = vadd.xlane.f32.xlu0 %v472_v3  ;;  %v277_v9 = vsel %vm33_vm0, %v273_v2, 0.0 }
 0x219   :  { %v821_v5 = vpop.eup %820  ;;  %736 = vmatmul.mubr.msk.f32.vlgmr.msra.gmra.mrb[0].mxu0 %vm33_vm0, %v274_v4 }
 0x21a   :  { %782 = vmatpush3.bf16.msra.mxu0 %v779_v47  ;;  %738 = vmatprep.mubr.msk.f32.mxu0 %vm33_vm0, %v275_v8  ;;  %v276_v46 = vsel %vm28_vm13, %v821_v5, 0.0 }
 0x21b   :  { %784 = vmatprep.subr.bf16.mxu0 %v783_v7  ;;  %v286_v13 = vsel %vm33_vm0, %v276_v46, 0.0 }
 0x21c   :  { %278 = vadd.xlane.f32.xlu0 %v277_v9 }
 0x21d   :  { %v823_v10 = vpop.eup %822  ;;  %739 = vmatmul.mubr.msk.f32.gmra.mrb[2].mxu0 %vm33_vm0, %v276_v46 }
 0x21e   :  { %786 = vmatpush3.bf16.msra.mxu0 %v783_v7  ;;  %749 = vmatprep.mubr.msk.f32.mxu0 %vm33_vm0, %v462_v50  ;;  %v465_v32 = vsel %vm28_vm13, %v823_v10, 0.0 }
 0x21f   :  { %v475_v11 = vsel %vm33_vm0, %v465_v32, 0.0 }
 0x220   :  { %284 = vadd.xlane.f32.xlu0 %v283_v48  ;;  %476 = vadd.xlane.f32.xlu1 %v475_v11 }
 0x221   :  { %750 = vmatmul.mubr.msk.f32.vlgmr.msra.gmra.mrb[4].mxu0 %vm33_vm0, %v463_v57 }
 0x222   :  { %752 = vmatprep.mubr.msk.f32.mxu0 %vm33_vm0, %v464_v1 }
 0x224   :  { %281 = vadd.xlane.f32.xlu1 %v280_v12 }
 0x225   :  { %753 = vmatmul.mubr.msk.f32.gmra.mrb[6].mxu0 %vm33_vm0, %v465_v32 }
 0x228   :  { %287 = vadd.xlane.f32.xlu1 %v286_v13 }
 0x29c   :  { %v468_v14 = vpop.xlane.xlu1 %467 }
 0x29d   :  { %v478_v18 = vmax.f32 %v468_v14, 1e-30 }
 0x2a1   :  { %v471_v6 = vpop.xlane.xlu0 %470 }
 0x2a2   :  { %v479_v15 = vmax.f32 %v471_v6, 1e-30 }
 0x2a4   :  { %824 = vrcp.f32 %v479_v15 }
 0x2a5   :  { %v474_v24 = vpop.xlane.xlu0 %473  ;;  %826 = vrcp.f32 %v478_v18 }
 0x2a6   :  { %v480_v26 = vmax.f32 %v474_v24, 1e-30 }
 0x2a9   :  { %v279_v21 = vpop.xlane.xlu0 %278 }
 0x2aa   :  { %v289_v42 = vmax.f32 %v279_v21, 1e-30 }
 0x2ad   :  { %v477_v22 = vpop.xlane.xlu1 %476  ;;  %v285_v40 = vpop.xlane.xlu0 %284 }
 0x2ae   :  { %v481_v25 = vmax.f32 %v477_v22, 1e-30  ;;  %v825_v31 = vpop.eup %824  ;;  %v291_v44 = vmax.f32 %v285_v40, 1e-30 }
 0x2af   :  { %v827_v34 = vpop.eup %826 }
 0x2b0   :  { %828 = vrcp.f32 %v481_v25 }
 0x2b1   :  { %830 = vrcp.f32 %v480_v26  ;;  %v282_v23 = vpop.xlane.xlu1 %281 }
 0x2b2   :  { %v290_v41 = vmax.f32 %v282_v23, 1e-30 }
 0x2b4   :  { %832 = vrcp.f32 %v290_v41 }
 0x2b5   :  { %v288_v43 = vpop.xlane.xlu1 %287  ;;  %834 = vrcp.f32 %v289_v42 }
 0x2b6   :  { %v292_v45 = vmax.f32 %v288_v43, 1e-30  ;;  %836 = vrcp.f32 %v291_v44 }
 0x2b8   :  { %838 = vrcp.f32 %v292_v45 }
 0x2ba   :  { %v829_v38 = vpop.eup %828 }
 0x2bb   :  { %v831_v16 = vpop.eup %830 }
 0x2be   :  { %v833_v47 = vpop.eup %832 }
 0x2bf   :  { %v835_v49 = vpop.eup %834 }
 0x2c0   :  { %v837_v55 = vpop.eup %836 }
 0x2c2   :  { %v839_v58 = vpop.eup %838 }
 0x2ec   :  { %v737_v27 = vpop.f32.mrb[0].mxu0 }
 0x2ed   :  { %v375_v28 = vpop.f32.mrb[1].mxu0  ;;  %v395_v50 = vmul.f32 %v833_v47, %v737_v27 }
 0x2ee   :  { %v394_v51 = vmul.f32 %v835_v49, %v375_v28 }
 0x2f0   :  { %v740_v29 = vpop.f32.mrb[2].mxu0 }
 0x2f1   :  { %v385_v30 = vpop.f32.mrb[3].mxu0  ;;  %v397_v60 = vmul.f32 %v839_v58, %v740_v29 }
 0x2f2   :  { %v396_v61 = vmul.f32 %v837_v55, %v385_v30 }
 0x2f4   :  { %v751_v33 = vpop.f32.mrb[4].mxu0 }
 0x2f5   :  { %v596_v35 = vmul.f32 %v825_v31, %v751_v33  ;;  %v576_v36 = vpop.f32.mrb[5].mxu0 }
 0x2f6   :  { %v595_v37 = vmul.f32 %v827_v34, %v576_v36 }
 0x2f7   :  { %605 = vrot.lane.b32.xlu1 %v596_v35, %s854_s12 }
 0x2f8   :  { %603 = vrot.lane.b32.xlu0 %v595_v37, %s854_s12  ;;  %v754_v39 = vpop.f32.mrb[6].mxu0 }
 0x2f9   :  { %v598_v17 = vmul.f32 %v829_v38, %v754_v39  ;;  %v586_v19 = vpop.f32.mrb[7].mxu0 }
 0x2fa   :  { %v597_v20 = vmul.f32 %v831_v16, %v586_v19 }
 0x2fc   :  { %609 = vrot.lane.b32.xlu0 %v598_v17, %s854_s12  ;;  %607 = vrot.lane.b32.xlu1 %v597_v20, %s854_s12 }
 0x369   :  { %v606_v52 = vpop.permute.xlu1 %605 }
 0x36a   :  { %v617_v53 = vsel %vm615_vm15, %v395_v50, %v606_v52  ;;  %v604_v54 = vpop.permute.xlu0 %603 }
 0x36b   :  { %v625_v56 = vmin.f32 %v617_v53, 0.0  ;;  %v616_v57 = vsel %vm615_vm15, %v394_v51, %v604_v54  ;;  %vm621_vm1 = vcmp.gt.f32.partialorder %v617_v53, 0.0 }
 0x36c   :  { %v624_v59 = vmin.f32 %v616_v57, 0.0  ;;  %vm620_vm2 = vcmp.gt.f32.partialorder %v616_v57, 0.0 }
 0x36d   :  { %v630_v62 = vmul.f32 1.442695, %v625_v56 }
 0x36e   :  { %v628_v63 = vmul.f32 1.442695, %v624_v59  ;;  %v610_v0 = vpop.permute.xlu0 %609  ;;  %v608_v1 = vpop.permute.xlu1 %607 }
 0x36f   :  { %840 = vpow2.f32 %v630_v62  ;;  %v619_v2 = vsel %vm615_vm15, %v397_v60, %v610_v0  ;;  %v618_v3 = vsel %vm615_vm15, %v396_v61, %v608_v1 }
 0x370   :  { %842 = vpow2.f32 %v628_v63  ;;  %v627_v4 = vmin.f32 %v619_v2, 0.0  ;;  %v626_v5 = vmin.f32 %v618_v3, 0.0  ;;  %vm623_vm3 = vcmp.gt.f32.partialorder %v619_v2, 0.0 }
 0x371   :  { %vm622_vm4 = vcmp.gt.f32.partialorder %v618_v3, 0.0 }
 0x372   :  { %v634_v7 = vmul.f32 1.442695, %v627_v4  ;;  %v632_v8 = vmul.f32 1.442695, %v626_v5 }
 0x374   :  { %844 = vpow2.f32 %v634_v7 }
 0x375   :  { %846 = vpow2.f32 %v632_v8 }
 0x379   :  { %v841_v46 = vpop.eup %840 }
 0x37a   :  { %v843_v9 = vpop.eup %842  ;;  %v670_v10 = vadd.f32 -1.0, %v841_v46 }
 0x37b   :  { %v669_v32 = vadd.f32 -1.0, %v843_v9 }
 0x37c   :  { %v641_v48 = vsel %vm621_vm1, %v617_v53, %v670_v10 }
 0x37d   :  { %645 = vst.msk [vmem:[%s1052_s4 + $0x8] sm:$0xff] %vm33_vm0, %v641_v48  ;;  %v640_v11 = vsel %vm620_vm2, %v616_v57, %v669_v32 }
 0x37e   :  { %v845_v12 = vpop.eup %844  ;;  %644 = vst.msk [vmem:[%s1052_s4] sm:$0xff] %vm33_vm0, %v640_v11 }
 0x37f   :  { %v847_v13 = vpop.eup %846  ;;  %v672_v6 = vadd.f32 -1.0, %v845_v12 }
 0x380   :  { %v671_v14 = vadd.f32 -1.0, %v847_v13 }
 0x381   :  { %v643_v15 = vsel %vm623_vm3, %v619_v2, %v672_v6 }
 0x382   :  { %647 = vst.msk [vmem:[%s1052_s4 + $0x18] sm:$0xff] %vm33_vm0, %v643_v15  ;;  %v642_v18 = vsel %vm622_vm4, %v618_v3, %v671_v14 }
 0x383   :  { %646 = vst.msk [vmem:[%s1052_s4 + $0x10] sm:$0xff] %vm33_vm0, %v642_v18 }

// kernel: gat_forward.5
= control target key start
LH: loop header
LB: loop body
LE: loop exit
PB: predicated region body
PF: predicated region fallthrough
CT: control target
= control target key end

     0   :  { %vm33_vm0 = vcmask 261120   ;;  %v590_v3 = vmov 0.0|0.0   ;;  %vm591_vm1 = vmmov 0   ;;  %v592_v4 = vmov 0.0   ;;  %s709_s2 = inlined_call_operand.vmem [shape: f32[32,9], index: 2, kind: input, shape index: {}]   ;;  %s710_s1 = inlined_call_operand.vmem [shape: f32[32,32], index: 1, kind: input, shape index: {}]   ;;  %s711_s3 = inlined_call_operand.vmem [shape: f32[1,32], index: 3, kind: input, shape index: {}]   ;;  %s712_s0 = inlined_call_operand.vmem [shape: f32[32,32], index: 0, kind: input, shape index: {}]   ;;  %s713_s4 = inlined_call_operand.vmem [shape: f32[32,8], index: 4, kind: output, shape index: {}]  }
   0x1   :  { %v29_v0 = vld [vmem:[%s709_s2] sm:$0xff]  ;;  %v30_v1 = vld [vmem:[%s709_s2 + $0x8] sm:$0xff]  ;;  %v31_v2 = vld [vmem:[%s709_s2 + $0x10] sm:$0xff]  ;;  %536 = vmatprep.subr.bf16.mxu1 %v590_v3  ;;  %511 = vmatprep.mubr.msk.f32.mxu1 %vm591_vm1, %v592_v4  ;;  %v593_v15 = vmov 8   ;;  %v225_v24 = vlaneseq  ;;  %vm398_vm11 = vcmask 64512  }
   0x2   :  { %v528_v5 = vpack.c.bf16 %v30_v1, %v29_v0  ;;  %v32_v6 = vld [vmem:[%s709_s2 + $0x18] sm:$0xff]  ;;  %v17_v7 = vld [vmem:[%s710_s1] sm:$0xff]  ;;  %v18_v8 = vld [vmem:[%s710_s1 + $0x8] sm:$0xff]  ;;  %556 = vset.pattern.permute.xlu0 %v593_v15  ;;  %557 = vset.pattern.permute.xlu1 %v593_v15 }
   0x3   :  { %v532_v9 = vpack.c.bf16 %v32_v6, %v31_v2  ;;  %497 = vmatprep.mubr.msk.f32.mxu0 %vm33_vm0, %v17_v7  ;;  %v537_v10 = vpack.c.bf16 %v18_v8, %v17_v7  ;;  %vm538_vm2 = vmpackc.low %vm33_vm0, %vm33_vm0  ;;  %v19_v11 = vld [vmem:[%s710_s1 + $0x10] sm:$0xff]  ;;  %v20_v12 = vld [vmem:[%s710_s1 + $0x18] sm:$0xff]  ;;  %v226_v25 = vshrl.u32 %v225_v24, 7 }
   0x4   :  { %529 = vmatprep.subr.bf16.mxu0 %v528_v5  ;;  %v541_v13 = vpack.c.bf16 %v20_v12, %v19_v11  ;;  %v131_v14 = vld [vmem:[%s711_s3] sm:$0x1]  ;;  %v22_v32 = vld [vmem:[%s712_s0 + $0x8] sm:$0xff]  ;;  %v23_v33 = vld [vmem:[%s712_s0 + $0x10] sm:$0xff] }
   0x5   :  { %531 = vmatpush3.bf16.msra.mxu0 %v528_v5  ;;  %539 = vmatpush3.bf16.xpose.msk.msra.mxu1 %vm538_vm2, %v537_v10  ;;  %v227_v26 = vsub.s32 0, %v226_v25  ;;  %v21_v29 = vld [vmem:[%s712_s0] sm:$0xff]  ;;  %vm26_vm5 = vcmp.gt.f32.partialorder %v22_v32, 0.0  ;;  %vm27_vm6 = vcmp.gt.f32.partialorder %v23_v33, 0.0  ;;  %v24_v40 = vld [vmem:[%s712_s0 + $0x18] sm:$0xff] }
   0x6   :  { %533 = vmatprep.subr.bf16.mxu0 %v532_v9  ;;  %540 = vmatprep.subr.bf16.mxu1 %v590_v3  ;;  %vm25_vm3 = vcmp.gt.f32.partialorder %v21_v29, 0.0  ;;  %vm28_vm9 = vcmp.gt.f32.partialorder %v24_v40, 0.0 }
   0x9   :  { %535 = vmatpush3.bf16.msra.mxu0 %v532_v9 }
   0xc   :  { %498 = vmatmul.mubr.msk.f32.vlgmr.msra.gmra.mrb[0].mxu0 %vm33_vm0, %v18_v8 }
   0xd   :  { %500 = vmatprep.mubr.msk.f32.mxu0 %vm33_vm0, %v19_v11  ;;  %543 = vmatpush3.bf16.xpose.msk.msra.mxu1 %vm538_vm2, %v541_v13 }
  0x10   :  { %501 = vmatmul.mubr.msk.f32.gmra.mrb[2].mxu0 %vm33_vm0, %v20_v12 }
  0x14   :  { %512 = vmatmul.mubr.msk.f32.vlgmr.msra.gmra.mrb[0].mxu1 %vm33_vm0, %v131_v14 }
  0xdf   :  { %v499_v16 = vpop.f32.mrb[0].mxu0 }
  0xe0   :  { %v112_v17 = vpop.f32.mrb[1].mxu0 }
  0xe1   :  { %v544_v18 = vpack.c.bf16 %v499_v16, %v112_v17  ;;  %207 = vperm.xlu0 %556, %v112_v17  }
  0xe3   :  { %v502_v19 = vpop.f32.mrb[2].mxu0  ;;  %545 = vmatprep.subr.bf16.mxu0 %v544_v18 }
  0xe4   :  { %v122_v20 = vpop.f32.mrb[3].mxu0  ;;  %547 = vmatpush3.bf16.msra.mxu0 %v544_v18 }
  0xe5   :  { %v548_v21 = vpack.c.bf16 %v502_v19, %v122_v20  ;;  %212 = vperm.xlu0 %556, %v499_v16   ;;  %217 = vperm.xlu1 %557, %v122_v20  }
  0xe7   :  { %549 = vmatprep.subr.bf16.mxu0 %v548_v21  ;;  %v201_v22 = vpop.f32.mrb[0].mxu1 }
  0xe8   :  { %551 = vmatpush3.bf16.msra.mxu0 %v548_v21  ;;  %v513_v23 = vpop.f32.mrb[1].mxu1  ;;  %v228_v27 = vrot.slane %v201_v22, %v227_v26 }
  0xe9   :  { %222 = vperm.xlu1 %557, %v502_v19  }
 0x160   :  { %v208_v28 = vpop.permute.xlu0 %207 }
 0x161   :  { %v229_v30 = vadd.f32 %v228_v27, %v208_v28 }
 0x163   :  { %v237_v31 = vmul.f32 0.2, %v229_v30  ;;  %vm233_vm4 = vcmp.gt.f32.partialorder %v229_v30, 0.0 }
 0x164   :  { %v213_v34 = vpop.permute.xlu0 %212  ;;  %v218_v35 = vpop.permute.xlu1 %217 }
 0x165   :  { %v230_v36 = vadd.f32 %v228_v27, %v213_v34  ;;  %v231_v37 = vadd.f32 %v228_v27, %v218_v35  ;;  %v241_v38 = vsel %vm233_vm4, %v229_v30, %v237_v31 }
 0x166   :  { %v245_v39 = vsel %vm25_vm3, %v241_v38, -1e+30 }
 0x167   :  { %v238_v41 = vmul.f32 0.2, %v230_v36  ;;  %v239_v42 = vmul.f32 0.2, %v231_v37  ;;  %v249_v43 = vsel %vm33_vm0, %v245_v39, -inf  ;;  %vm234_vm7 = vcmp.gt.f32.partialorder %v230_v36, 0.0 }
 0x168   :  { %v223_v44 = vpop.permute.xlu1 %222  ;;  %250 = vmax.xlane.f32.xlu0 %v249_v43  ;;  %vm235_vm8 = vcmp.gt.f32.partialorder %v231_v37, 0.0 }
 0x169   :  { %v232_v45 = vadd.f32 %v228_v27, %v223_v44  ;;  %v242_v46 = vsel %vm234_vm7, %v230_v36, %v238_v41  ;;  %v243_v47 = vsel %vm235_vm8, %v231_v37, %v239_v42 }
 0x16a   :  { %v246_v48 = vsel %vm26_vm5, %v242_v46, -1e+30  ;;  %v247_v49 = vsel %vm27_vm6, %v243_v47, -1e+30 }
 0x16b   :  { %v240_v50 = vmul.f32 0.2, %v232_v45  ;;  %v252_v51 = vsel %vm33_vm0, %v246_v48, -inf  ;;  %v255_v52 = vsel %vm33_vm0, %v247_v49, -inf  ;;  %vm236_vm10 = vcmp.gt.f32.partialorder %v232_v45, 0.0 }
 0x16c   :  { %253 = vmax.xlane.f32.xlu1 %v252_v51  ;;  %256 = vmax.xlane.f32.xlu0 %v255_v52 }
 0x16d   :  { %v244_v53 = vsel %vm236_vm10, %v232_v45, %v240_v50 }
 0x16e   :  { %v248_v54 = vsel %vm28_vm9, %v244_v53, -1e+30 }
 0x16f   :  { %v258_v55 = vsel %vm33_vm0, %v248_v54, -inf }
 0x170   :  { %259 = vmax.xlane.f32.xlu0 %v258_v55 }
 0x1f5   :  { %v251_v56 = vpop.xlane.xlu0 %250 }
 0x1f6   :  { %v261_v57 = vsub.f32 %v245_v39, %v251_v56 }
 0x1f8   :  { %v265_v58 = vmul.f32 1.442695, %v261_v57 }
 0x1f9   :  { %v254_v59 = vpop.xlane.xlu1 %253  ;;  %v257_v60 = vpop.xlane.xlu0 %256 }
 0x1fa   :  { %558 = vpow2.f32 %v265_v58  ;;  %v262_v61 = vsub.f32 %v246_v48, %v254_v59  ;;  %v263_v62 = vsub.f32 %v247_v49, %v257_v60 }
 0x1fc   :  { %v267_v63 = vmul.f32 1.442695, %v262_v61  ;;  %v269_v0 = vmul.f32 1.442695, %v263_v62 }
 0x1fd   :  { %v260_v1 = vpop.xlane.xlu0 %259 }
 0x1fe   :  { %560 = vpow2.f32 %v267_v63  ;;  %v264_v2 = vsub.f32 %v248_v54, %v260_v1 }
 0x1ff   :  { %562 = vpow2.f32 %v269_v0 }
 0x200   :  { %v271_v3 = vmul.f32 1.442695, %v264_v2 }
 0x202   :  { %564 = vpow2.f32 %v271_v3 }
 0x204   :  { %v559_v4 = vpop.eup %558 }
 0x205   :  { %v273_v5 = vsel %vm25_vm3, %v559_v4, 0.0 }
 0x206   :  { %522 = vmatprep.mubr.msk.f32.mxu0 %vm33_vm0, %v273_v5  ;;  %v277_v6 = vsel %vm33_vm0, %v273_v5, 0.0 }
 0x207   :  { %278 = vadd.xlane.f32.xlu1 %v277_v6 }
 0x208   :  { %v561_v7 = vpop.eup %560 }
 0x209   :  { %v563_v8 = vpop.eup %562  ;;  %v274_v9 = vsel %vm26_vm5, %v561_v7, 0.0 }
 0x20a   :  { %523 = vmatmul.mubr.msk.f32.vlgmr.msra.gmra.mrb[4].mxu0 %vm33_vm0, %v274_v9  ;;  %v280_v10 = vsel %vm33_vm0, %v274_v9, 0.0  ;;  %v275_v11 = vsel %vm27_vm6, %v563_v8, 0.0 }
 0x20b   :  { %281 = vadd.xlane.f32.xlu0 %v280_v10  ;;  %525 = vmatprep.mubr.msk.f32.mxu0 %vm33_vm0, %v275_v11  ;;  %v283_v12 = vsel %vm33_vm0, %v275_v11, 0.0 }
 0x20c   :  { %v565_v13 = vpop.eup %564  ;;  %284 = vadd.xlane.f32.xlu1 %v283_v12 }
 0x20d   :  { %v276_v14 = vsel %vm28_vm9, %v565_v13, 0.0 }
 0x20e   :  { %526 = vmatmul.mubr.msk.f32.gmra.mrb[6].mxu0 %vm33_vm0, %v276_v14  ;;  %v286_v15 = vsel %vm33_vm0, %v276_v14, 0.0 }
 0x20f   :  { %287 = vadd.xlane.f32.xlu0 %v286_v15 }
 0x294   :  { %v279_v17 = vpop.xlane.xlu1 %278 }
 0x295   :  { %v289_v19 = vmax.f32 %v279_v17, 1e-30 }
 0x298   :  { %v282_v16 = vpop.xlane.xlu0 %281 }
 0x299   :  { %v290_v18 = vmax.f32 %v282_v16, 1e-30  ;;  %v285_v21 = vpop.xlane.xlu1 %284 }
 0x29a   :  { %v291_v23 = vmax.f32 %v285_v21, 1e-30 }
 0x29b   :  { %566 = vrcp.f32 %v290_v18 }
 0x29c   :  { %v288_v20 = vpop.xlane.xlu0 %287  ;;  %568 = vrcp.f32 %v289_v19 }
 0x29d   :  { %v292_v22 = vmax.f32 %v288_v20, 1e-30 }
 0x29f   :  { %570 = vrcp.f32 %v292_v22 }
 0x2a0   :  { %572 = vrcp.f32 %v291_v23 }
 0x2a5   :  { %v567_v24 = vpop.eup %566 }
 0x2a6   :  { %v569_v26 = vpop.eup %568 }
 0x2a9   :  { %v571_v31 = vpop.eup %570 }
 0x2aa   :  { %v573_v34 = vpop.eup %572 }
 0x2dd   :  { %v524_v25 = vpop.f32.mrb[4].mxu0 }
 0x2de   :  { %v395_v27 = vmul.f32 %v567_v24, %v524_v25  ;;  %v375_v28 = vpop.f32.mrb[5].mxu0 }
 0x2df   :  { %v394_v29 = vmul.f32 %v569_v26, %v375_v28 }
 0x2e0   :  { %v402_v30 = vsel %vm398_vm11, %v395_v27, -inf }
 0x2e1   :  { %v527_v32 = vpop.f32.mrb[6].mxu0  ;;  %403 = vmax.xlane.f32.xlu0 %v402_v30  ;;  %v399_v33 = vsel %vm398_vm11, %v394_v29, -inf }
 0x2e2   :  { %v397_v35 = vmul.f32 %v571_v31, %v527_v32  ;;  %400 = vmax.xlane.f32.xlu1 %v399_v33  ;;  %v385_v36 = vpop.f32.mrb[7].mxu0 }
 0x2e3   :  { %v396_v37 = vmul.f32 %v573_v34, %v385_v36 }
 0x2e4   :  { %v408_v38 = vsel %vm398_vm11, %v397_v35, -inf }
 0x2e5   :  { %409 = vmax.xlane.f32.xlu0 %v408_v38  ;;  %v405_v39 = vsel %vm398_vm11, %v396_v37, -inf }
 0x2e6   :  { %406 = vmax.xlane.f32.xlu1 %v405_v39 }
 0x36e   :  { %v404_v40 = vpop.xlane.xlu0 %403 }
 0x36f   :  { %v412_v41 = vsub.f32 %v395_v27, %v404_v40  ;;  %v401_v42 = vpop.xlane.xlu1 %400 }
 0x370   :  { %v411_v43 = vsub.f32 %v394_v29, %v401_v42 }
 0x371   :  { %v417_v44 = vmul.f32 1.442695, %v412_v41 }
 0x372   :  { %v415_v45 = vmul.f32 1.442695, %v411_v43  ;;  %v410_v46 = vpop.xlane.xlu0 %409 }
 0x373   :  { %574 = vpow2.f32 %v417_v44  ;;  %v414_v47 = vsub.f32 %v397_v35, %v410_v46  ;;  %v407_v48 = vpop.xlane.xlu1 %406 }
 0x374   :  { %576 = vpow2.f32 %v415_v45  ;;  %v413_v49 = vsub.f32 %v396_v37, %v407_v48 }
 0x375   :  { %v421_v50 = vmul.f32 1.442695, %v414_v47 }
 0x376   :  { %v419_v51 = vmul.f32 1.442695, %v413_v49 }
 0x377   :  { %578 = vpow2.f32 %v421_v50 }
 0x378   :  { %580 = vpow2.f32 %v419_v51 }
 0x37d   :  { %v575_v52 = vpop.eup %574 }
 0x37e   :  { %v577_v53 = vpop.eup %576  ;;  %v426_v54 = vsel %vm398_vm11, %v575_v52, 0.0 }
 0x37f   :  { %427 = vadd.xlane.f32.xlu0 %v426_v54  ;;  %v423_v55 = vsel %vm398_vm11, %v577_v53, 0.0 }
 0x380   :  { %424 = vadd.xlane.f32.xlu1 %v423_v55 }
 0x381   :  { %v579_v56 = vpop.eup %578 }
 0x382   :  { %v581_v57 = vpop.eup %580  ;;  %v432_v58 = vsel %vm398_vm11, %v579_v56, 0.0 }
 0x383   :  { %433 = vadd.xlane.f32.xlu0 %v432_v58  ;;  %v429_v59 = vsel %vm398_vm11, %v581_v57, 0.0 }
 0x384   :  { %430 = vadd.xlane.f32.xlu1 %v429_v59 }
 0x40c   :  { %v428_v60 = vpop.xlane.xlu0 %427 }
 0x40d   :  { %582 = vlog2.f32 %v428_v60  ;;  %v425_v61 = vpop.xlane.xlu1 %424 }
 0x40e   :  { %584 = vlog2.f32 %v425_v61 }
 0x410   :  { %v434_v62 = vpop.xlane.xlu0 %433 }
 0x411   :  { %586 = vlog2.f32 %v434_v62  ;;  %v431_v63 = vpop.xlane.xlu1 %430 }
 0x412   :  { %588 = vlog2.f32 %v431_v63 }
 0x417   :  { %v583_v0 = vpop.eup %582 }
 0x418   :  { %v585_v1 = vpop.eup %584  ;;  %v438_v2 = vmul.f32 0.6931472, %v583_v0 }
 0x419   :  { %v436_v3 = vmul.f32 0.6931472, %v585_v1 }
 0x41a   :  { %v444_v4 = vsub.f32 %v412_v41, %v438_v2 }
 0x41b   :  { %v587_v5 = vpop.eup %586  ;;  %v443_v6 = vsub.f32 %v411_v43, %v436_v3 }
 0x41c   :  { %v589_v7 = vpop.eup %588  ;;  %448 = vst.msk [vmem:[%s713_s4 + $0x8] sm:$0xff] %vm398_vm11, %v444_v4  ;;  %v442_v8 = vmul.f32 0.6931472, %v587_v5 }
 0x41d   :  { %447 = vst.msk [vmem:[%s713_s4] sm:$0xff] %vm398_vm11, %v443_v6  ;;  %v440_v9 = vmul.f32 0.6931472, %v589_v7 }
 0x41e   :  { %v446_v10 = vsub.f32 %v414_v47, %v442_v8 }
 0x41f   :  { %v445_v11 = vsub.f32 %v413_v49, %v440_v9 }
 0x420   :  { %450 = vst.msk [vmem:[%s713_s4 + $0x18] sm:$0xff] %vm398_vm11, %v446_v10 }
 0x421   :  { %449 = vst.msk [vmem:[%s713_s4 + $0x10] sm:$0xff] %vm398_vm11, %v445_v11 }

</bundles_post_ra>
